<compile_context>
chip_gen: v5e
topology: v5e:2x2
jax: 0.10.0
libtpu: 0.0.40
codegen_flags: <defaults>
</compile_context>

<pallas_src>
import math

import jax
import jax.numpy as jnp
import numpy as np
from jax.experimental import pallas as pl
from jax.experimental.pallas import tpu as pltpu

DIM = 32          # dim_size
HEADS = 4         # num_heads
HEAD_DIM = DIM // HEADS
FF_DIM = DIM * 4
EPS = 1e-5        # nn.LayerNorm default eps


# ----------------------------- kernel helpers ------------------------------

def _layernorm(x, gamma, beta):
    mu = jnp.mean(x, axis=-1, keepdims=True)
    xc = x - mu
    var = jnp.mean(xc * xc, axis=-1, keepdims=True)
    return xc * jax.lax.rsqrt(var + EPS) * gamma + beta


def _mha(q, k, v, kv_head_mask, group_sum):
    """Multi-head attention for one batch, no Q replication, no in-kernel iotas.

    q:            (S, D)        1/sqrt(head_dim) already folded into q.
    k, v:         (T, D)
    kv_head_mask: (H*T, D)      0/1; row block h keeps only head-h columns.
    group_sum:    (H*T, H*T)    0/1 block-diagonal (per-head column groups).
    Returns (S, D) = per-head attention outputs concatenated along D.
    """
    T, D = k.shape
    HT = kv_head_mask.shape[0]

    # Head-replicate K/V along rows (free leading-dim reshape) and head-mask columns.
    k_rep = jnp.broadcast_to(k[None], (HEADS, T, D)).reshape(HT, D) * kv_head_mask
    v_rep = jnp.broadcast_to(v[None], (HEADS, T, D)).reshape(HT, D) * kv_head_mask

    # One score matmul: column block h holds head-h scores (mask picks head-h columns of K).
    # dot_general contracts the last dim of both operands -> no explicit K transpose.
    s = jax.lax.dot_general(q, k_rep, (((1,), (1,)), ((), ())),
                            preferred_element_type=jnp.float32)        # (S, H*T)

    # Global row max is subtracted (it cancels inside each head's softmax); per-head max
    # differences would need to exceed ~88 to matter numerically in f32.
    s = s - jnp.max(s, axis=-1, keepdims=True)
    p = jnp.exp(s)

    # Per-head softmax denominators, broadcast back to every column via one MXU matmul
    # against the precomputed block-diagonal 0/1 matrix.
    denom = jnp.dot(p, group_sum, preferred_element_type=jnp.float32)  # (S, H*T)
    # approx=True would move this to the EUP slot; kept exact for the tight f32 tolerance.
    p = p * pl.reciprocal(denom, approx=False)

    # V is head-masked, so this matmul applies per-head attention AND concatenates heads.
    return jnp.dot(p, v_rep, preferred_element_type=jnp.float32)       # (S, D)


# ------------------------------- the kernel --------------------------------

def decoder_layer_kernel(
    x_ref, enc_ref,
    s_wqkv_ref, s_bqkv_ref, s_wo_ref, s_bo_ref,          # self-attention (QKV fused)
    c_wq_ref, c_bq_ref, c_wkv_ref, c_bkv_ref, c_wo_ref, c_bo_ref,   # cross-attention
    w1_ref, b1_ref, w2_ref, b2_ref,                       # feed-forward
    gamma_ref, beta_ref,                                  # (3, D) layernorm params
    self_mask_ref, self_gsum_ref, cross_mask_ref, cross_gsum_ref,   # precomputed masks
    out_ref,
):
    D = DIM
    x = x_ref[...]      # (S, D)  -- one batch
    enc = enc_ref[...]  # (T, D)

    # 1) self-attention + residual + norm1 (fused QKV, scale folded into Wq)
    qkv = jnp.dot(x, s_wqkv_ref[...], preferred_element_type=jnp.float32) + s_bqkv_ref[...]
    sa = _mha(qkv[:, :D], qkv[:, D:2 * D], qkv[:, 2 * D:],
              self_mask_ref[...], self_gsum_ref[...])
    sa = jnp.dot(sa, s_wo_ref[...], preferred_element_type=jnp.float32) + s_bo_ref[...]
    # TODO(synk): dropout is identity (eval semantics).
    x1 = _layernorm(x + sa, gamma_ref[0:1, :], beta_ref[0:1, :])

    # 2) cross-attention + residual + norm2
    cq = jnp.dot(x1, c_wq_ref[...], preferred_element_type=jnp.float32) + c_bq_ref[...]
    ckv = jnp.dot(enc, c_wkv_ref[...], preferred_element_type=jnp.float32) + c_bkv_ref[...]
    ca = _mha(cq, ckv[:, :D], ckv[:, D:], cross_mask_ref[...], cross_gsum_ref[...])
    ca = jnp.dot(ca, c_wo_ref[...], preferred_element_type=jnp.float32) + c_bo_ref[...]
    x2 = _layernorm(x1 + ca, gamma_ref[1:2, :], beta_ref[1:2, :])

    # 3) feed-forward + residual + norm3
    h = jnp.maximum(jnp.dot(x2, w1_ref[...], preferred_element_type=jnp.float32)
                    + b1_ref[...], 0.0)
    ff = jnp.dot(h, w2_ref[...], preferred_element_type=jnp.float32) + b2_ref[...]
    out_ref[...] = _layernorm(x2 + ff, gamma_ref[2:3, :], beta_ref[2:3, :])


# ------------------------------- the wrapper --------------------------------

def decoder_layer(x, encoder_output, params):
    B, S, D = x.shape
    T = encoder_output.shape[1]
    hd = D // HEADS
    scale = 1.0 / math.sqrt(hd)

    # Host-side param prep: fuse QKV weights and fold 1/sqrt(hd) into Wq/bq.
    s_wqkv = jnp.concatenate(
        [params["self_w_in"][0] * scale, params["self_w_in"][1], params["self_w_in"][2]],
        axis=1)                                                      # (D, 3D)
    s_bqkv = jnp.concatenate(
        [params["self_b_in"][0] * scale, params["self_b_in"][1], params["self_b_in"][2]]
    )[None, :]                                                       # (1, 3D)
    c_wq = params["cross_w_in"][0] * scale                           # (D, D)
    c_bq = (params["cross_b_in"][0] * scale)[None, :]                # (1, D)
    c_wkv = jnp.concatenate([params["cross_w_in"][1], params["cross_w_in"][2]], axis=1)
    c_bkv = jnp.concatenate([params["cross_b_in"][1], params["cross_b_in"][2]])[None, :]

    # Host-precomputed masks (no in-kernel iota / integer divide).
    def head_mask(n):
        row_head = np.repeat(np.arange(HEADS), n)[:, None]           # (H*n, 1)
        col_head = (np.arange(D) // hd)[None, :]                     # (1, D)
        return jnp.asarray((row_head == col_head).astype(np.float32))

    def group_sum(n):
        g = np.repeat(np.arange(HEADS), n)
        return jnp.asarray((g[:, None] == g[None, :]).astype(np.float32))

    operands = [
        x.reshape(B * S, D), encoder_output.reshape(B * T, D),
        s_wqkv, s_bqkv, params["self_w_o"], params["self_b_o"],
        c_wq, c_bq, c_wkv, c_bkv, params["cross_w_o"], params["cross_b_o"],
        params["w1"], params["b1"], params["w2"], params["b2"],
        params["gammas"], params["betas"],
        head_mask(S), group_sum(S), head_mask(T), group_sum(T),
    ]

    # x/enc/out: blocked along rows only (one batch per grid step, full D width).
    # Everything else: constant index_map -> stays VMEM-resident across grid steps.
    in_specs = [
        pl.BlockSpec((S, D), lambda b: (b, 0)),
        pl.BlockSpec((T, D), lambda b: (b, 0)),
    ] + [pl.BlockSpec(a.shape, lambda b: (0, 0)) for a in operands[2:]]

    out = pl.pallas_call(
        decoder_layer_kernel,
        grid=(B,),
        out_shape=jax.ShapeDtypeStruct((B * S, D), jnp.float32),
        in_specs=in_specs,
        out_specs=pl.BlockSpec((S, D), lambda b: (b, 0)),
        compiler_params=pltpu.CompilerParams(dimension_semantics=("parallel",)),
    )(*operands)
    return out.reshape(B, S, D)


# ------------------------- pure-JAX reference check -------------------------

def _ref_mha(q_in, kv_in, w_in, b_in, w_o, b_o, num_heads):
    hd = q_in.shape[-1] // num_heads
    q = q_in @ w_in[0] + b_in[0]
    k = kv_in @ w_in[1] + b_in[1]
    v = kv_in @ w_in[2] + b_in[2]
    S, T = q.shape[1], k.shape[1]
    q = q.reshape(q.shape[0], S, num_heads, hd)
    k = k.reshape(k.shape[0], T, num_heads, hd)
    v = v.reshape(v.shape[0], T, num_heads, hd)
    s = jnp.einsum("bshd,bthd->bhst", q, k) / math.sqrt(hd)
    p = jax.nn.softmax(s, axis=-1)
    o = jnp.einsum("bhst,bthd->bshd", p, v).reshape(q_in.shape[0], S, -1)
    return o @ w_o + b_o


def _ref_layernorm(x, g, b):
    mu = jnp.mean(x, axis=-1, keepdims=True)
    var = jnp.mean((x - mu) ** 2, axis=-1, keepdims=True)
    return (x - mu) * jax.lax.rsqrt(var + EPS) * g + b


def decoder_layer_reference(x, enc, p):
    sa = _ref_mha(x, x, p["self_w_in"], p["self_b_in"], p["self_w_o"], p["self_b_o"], HEADS)
    x1 = _ref_layernorm(x + sa, p["gammas"][0], p["betas"][0])
    ca = _ref_mha(x1, enc, p["cross_w_in"], p["cross_b_in"], p["cross_w_o"], p["cross_b_o"], HEADS)
    x2 = _ref_layernorm(x1 + ca, p["gammas"][1], p["betas"][1])
    h = jnp.maximum(x2 @ p["w1"] + p["b1"], 0.0)
    ff = h @ p["w2"] + p["b2"]
    return _ref_layernorm(x2 + ff, p["gammas"][2], p["betas"][2])


# ----------------------------------- main -----------------------------------

if __name__ == "__main__":
    B, S, T, D = 2, 8, 8, DIM
    key = jax.random.PRNGKey(0)
    ks = jax.random.split(key, 16)

    def nrm(k, shape, scale=0.1):
        return (scale * jax.random.normal(k, shape)).astype(jnp.float32)

    params = {
        # attention weights stored pre-transposed: projection is x @ W (W: (D_in, D_out))
        "self_w_in": nrm(ks[0], (3, D, D)),
        "self_b_in": nrm(ks[1], (3, D)),
        "self_w_o": nrm(ks[2], (D, D)),
        "self_b_o": nrm(ks[3], (1, D)),
        "cross_w_in": nrm(ks[4], (3, D, D)),
        "cross_b_in": nrm(ks[5], (3, D)),
        "cross_w_o": nrm(ks[6], (D, D)),
        "cross_b_o": nrm(ks[7], (1, D)),
        "w1": nrm(ks[8], (D, FF_DIM)),
        "b1": nrm(ks[9], (1, FF_DIM)),
        "w2": nrm(ks[10], (FF_DIM, D)),
        "b2": nrm(ks[11], (1, D)),
        "gammas": jnp.ones((3, D), jnp.float32),
        "betas": jnp.zeros((3, D), jnp.float32),
    }

    x = jax.random.normal(ks[12], (B, S, D), dtype=jnp.float32)
    enc = jax.random.normal(ks[13], (B, T, D), dtype=jnp.float32)

    out = decoder_layer(x, enc, params)
    out = jax.block_until_ready(out)

    ref = decoder_layer_reference(x, enc, params)
    np.testing.assert_allclose(np.asarray(out), np.asarray(ref), atol=1e-4, rtol=1e-4)

    print("KERNEL_OK")
</pallas_src>

<mosaic_0001>
module attributes {stable_mosaic.version = 11 : i64} {
  func.func @decoder_layer_kernel(%arg0: i32, %arg1: memref<8x32xf32, #tpu.memory_space<vmem>>, %arg2: memref<8x32xf32, #tpu.memory_space<vmem>>, %arg3: memref<32x96xf32, #tpu.memory_space<vmem>>, %arg4: memref<1x96xf32, #tpu.memory_space<vmem>>, %arg5: memref<32x32xf32, #tpu.memory_space<vmem>>, %arg6: memref<1x32xf32, #tpu.memory_space<vmem>>, %arg7: memref<32x32xf32, #tpu.memory_space<vmem>>, %arg8: memref<1x32xf32, #tpu.memory_space<vmem>>, %arg9: memref<32x64xf32, #tpu.memory_space<vmem>>, %arg10: memref<1x64xf32, #tpu.memory_space<vmem>>, %arg11: memref<32x32xf32, #tpu.memory_space<vmem>>, %arg12: memref<1x32xf32, #tpu.memory_space<vmem>>, %arg13: memref<32x128xf32, #tpu.memory_space<vmem>>, %arg14: memref<1x128xf32, #tpu.memory_space<vmem>>, %arg15: memref<128x32xf32, #tpu.memory_space<vmem>>, %arg16: memref<1x32xf32, #tpu.memory_space<vmem>>, %arg17: memref<3x32xf32, #tpu.memory_space<vmem>>, %arg18: memref<3x32xf32, #tpu.memory_space<vmem>>, %arg19: memref<32x32xf32, #tpu.memory_space<vmem>>, %arg20: memref<32x32xf32, #tpu.memory_space<vmem>>, %arg21: memref<32x32xf32, #tpu.memory_space<vmem>>, %arg22: memref<32x32xf32, #tpu.memory_space<vmem>>, %arg23: memref<8x32xf32, #tpu.memory_space<vmem>>) attributes {dimension_semantics = [#tpu.dimension_semantics<parallel>], iteration_bounds = array<i64: 2>, scalar_prefetch = 0 : i64, scratch_operands = 0 : i64, tpu.core_type = #tpu.core_type<tc>, window_params = [{transform_indices = @transform_0, window_bounds = array<i64: 8, 32>}, {transform_indices = @transform_1, window_bounds = array<i64: 8, 32>}, {pipeline_mode = #tpu.pipeline_mode<synchronous>, transform_indices = @transform_2, window_bounds = array<i64: 32, 96>}, {pipeline_mode = #tpu.pipeline_mode<synchronous>, transform_indices = @transform_3, window_bounds = array<i64: 1, 96>}, {pipeline_mode = #tpu.pipeline_mode<synchronous>, transform_indices = @transform_4, window_bounds = array<i64: 32, 32>}, {pipeline_mode = #tpu.pipeline_mode<synchronous>, transform_indices = @transform_5, window_bounds = array<i64: 1, 32>}, {pipeline_mode = #tpu.pipeline_mode<synchronous>, transform_indices = @transform_6, window_bounds = array<i64: 32, 32>}, {pipeline_mode = #tpu.pipeline_mode<synchronous>, transform_indices = @transform_7, window_bounds = array<i64: 1, 32>}, {pipeline_mode = #tpu.pipeline_mode<synchronous>, transform_indices = @transform_8, window_bounds = array<i64: 32, 64>}, {pipeline_mode = #tpu.pipeline_mode<synchronous>, transform_indices = @transform_9, window_bounds = array<i64: 1, 64>}, {pipeline_mode = #tpu.pipeline_mode<synchronous>, transform_indices = @transform_10, window_bounds = array<i64: 32, 32>}, {pipeline_mode = #tpu.pipeline_mode<synchronous>, transform_indices = @transform_11, window_bounds = array<i64: 1, 32>}, {pipeline_mode = #tpu.pipeline_mode<synchronous>, transform_indices = @transform_12, window_bounds = array<i64: 32, 128>}, {pipeline_mode = #tpu.pipeline_mode<synchronous>, transform_indices = @transform_13, window_bounds = array<i64: 1, 128>}, {pipeline_mode = #tpu.pipeline_mode<synchronous>, transform_indices = @transform_14, window_bounds = array<i64: 128, 32>}, {pipeline_mode = #tpu.pipeline_mode<synchronous>, transform_indices = @transform_15, window_bounds = array<i64: 1, 32>}, {pipeline_mode = #tpu.pipeline_mode<synchronous>, transform_indices = @transform_16, window_bounds = array<i64: 3, 32>}, {pipeline_mode = #tpu.pipeline_mode<synchronous>, transform_indices = @transform_17, window_bounds = array<i64: 3, 32>}, {pipeline_mode = #tpu.pipeline_mode<synchronous>, transform_indices = @transform_18, window_bounds = array<i64: 32, 32>}, {pipeline_mode = #tpu.pipeline_mode<synchronous>, transform_indices = @transform_19, window_bounds = array<i64: 32, 32>}, {pipeline_mode = #tpu.pipeline_mode<synchronous>, transform_indices = @transform_20, window_bounds = array<i64: 32, 32>}, {pipeline_mode = #tpu.pipeline_mode<synchronous>, transform_indices = @transform_21, window_bounds = array<i64: 32, 32>}, {transform_indices = @transform_22, window_bounds = array<i64: 8, 32>}]} {
    %c0 = arith.constant 0 : index
    %c0_0 = arith.constant 0 : index
    %0 = vector.load %arg1[%c0, %c0_0] : memref<8x32xf32, #tpu.memory_space<vmem>>, vector<8x32xf32>
    %c0_1 = arith.constant 0 : index
    %c0_2 = arith.constant 0 : index
    %1 = vector.load %arg2[%c0_1, %c0_2] : memref<8x32xf32, #tpu.memory_space<vmem>>, vector<8x32xf32>
    %c0_3 = arith.constant 0 : index
    %c0_4 = arith.constant 0 : index
    %2 = vector.load %arg3[%c0_3, %c0_4] : memref<32x96xf32, #tpu.memory_space<vmem>>, vector<32x96xf32>
    %cst = arith.constant dense<0.000000e+00> : vector<8x96xf32>
    %3 = tpu.matmul %0, %2, %cst {dimension_numbers = #tpu.dot_dimension_numbers<[1], [0], [0], [1], [0, 0, 1, 1], [], []>} : vector<8x32xf32>, vector<32x96xf32>, vector<8x96xf32> -> vector<8x96xf32>
    %c0_5 = arith.constant 0 : index
    %c0_6 = arith.constant 0 : index
    %4 = vector.load %arg4[%c0_5, %c0_6] : memref<1x96xf32, #tpu.memory_space<vmem>>, vector<1x96xf32>
    %5 = vector.broadcast %4 : vector<1x96xf32> to vector<8x96xf32>
    %6 = arith.addf %3, %5 : vector<8x96xf32>
    %7 = vector.extract_strided_slice %6 {offsets = [0, 0], sizes = [8, 32], strides = [1, 1]} : vector<8x96xf32> to vector<8x32xf32>
    %8 = vector.extract_strided_slice %6 {offsets = [0, 32], sizes = [8, 32], strides = [1, 1]} : vector<8x96xf32> to vector<8x32xf32>
    %9 = vector.extract_strided_slice %6 {offsets = [0, 64], sizes = [8, 32], strides = [1, 1]} : vector<8x96xf32> to vector<8x32xf32>
    %c0_7 = arith.constant 0 : index
    %c0_8 = arith.constant 0 : index
    %10 = vector.load %arg19[%c0_7, %c0_8] : memref<32x32xf32, #tpu.memory_space<vmem>>, vector<32x32xf32>
    %c0_9 = arith.constant 0 : index
    %c0_10 = arith.constant 0 : index
    %11 = vector.load %arg20[%c0_9, %c0_10] : memref<32x32xf32, #tpu.memory_space<vmem>>, vector<32x32xf32>
    %12 = vector.shape_cast %8 : vector<8x32xf32> to vector<1x8x32xf32>
    %13 = vector.shape_cast %12 : vector<1x8x32xf32> to vector<1x8x32xf32>
    %14 = vector.broadcast %13 : vector<1x8x32xf32> to vector<4x8x32xf32>
    %15 = vector.shape_cast %14 : vector<4x8x32xf32> to vector<32x32xf32>
    %16 = arith.mulf %15, %10 : vector<32x32xf32>
    %17 = vector.shape_cast %9 : vector<8x32xf32> to vector<1x8x32xf32>
    %18 = vector.shape_cast %17 : vector<1x8x32xf32> to vector<1x8x32xf32>
    %19 = vector.broadcast %18 : vector<1x8x32xf32> to vector<4x8x32xf32>
    %20 = vector.shape_cast %19 : vector<4x8x32xf32> to vector<32x32xf32>
    %21 = arith.mulf %20, %10 : vector<32x32xf32>
    %cst_11 = arith.constant dense<0.000000e+00> : vector<8x32xf32>
    %22 = tpu.matmul %7, %16, %cst_11 {dimension_numbers = #tpu.dot_dimension_numbers<[1], [1], [0], [0], [0, 0, 1, 0], [], []>} : vector<8x32xf32>, vector<32x32xf32>, vector<8x32xf32> -> vector<8x32xf32>
    %cst_12 = arith.constant dense<0xFF800000> : vector<8xf32>
    %23 = vector.multi_reduction <maximumf>, %22, %cst_12 [1] : vector<8x32xf32> to vector<8xf32>
    %24 = vector.shape_cast %23 : vector<8xf32> to vector<8x1xf32>
    %25 = vector.broadcast %24 : vector<8x1xf32> to vector<8x32xf32>
    %26 = arith.subf %22, %25 : vector<8x32xf32>
    %27 = math.exp %26 : vector<8x32xf32>
    %cst_13 = arith.constant dense<0.000000e+00> : vector<8x32xf32>
    %28 = tpu.matmul %27, %11, %cst_13 {dimension_numbers = #tpu.dot_dimension_numbers<[1], [0], [0], [1], [0, 0, 1, 1], [], []>} : vector<8x32xf32>, vector<32x32xf32>, vector<8x32xf32> -> vector<8x32xf32>
    %29 = tpu.reciprocal %28 : vector<8x32xf32> -> vector<8x32xf32>
    %30 = arith.mulf %27, %29 : vector<8x32xf32>
    %cst_14 = arith.constant dense<0.000000e+00> : vector<8x32xf32>
    %31 = tpu.matmul %30, %21, %cst_14 {dimension_numbers = #tpu.dot_dimension_numbers<[1], [0], [0], [1], [0, 0, 1, 1], [], []>} : vector<8x32xf32>, vector<32x32xf32>, vector<8x32xf32> -> vector<8x32xf32>
    %c0_15 = arith.constant 0 : index
    %c0_16 = arith.constant 0 : index
    %32 = vector.load %arg5[%c0_15, %c0_16] : memref<32x32xf32, #tpu.memory_space<vmem>>, vector<32x32xf32>
    %cst_17 = arith.constant dense<0.000000e+00> : vector<8x32xf32>
    %33 = tpu.matmul %31, %32, %cst_17 {dimension_numbers = #tpu.dot_dimension_numbers<[1], [0], [0], [1], [0, 0, 1, 1], [], []>} : vector<8x32xf32>, vector<32x32xf32>, vector<8x32xf32> -> vector<8x32xf32>
    %c0_18 = arith.constant 0 : index
    %c0_19 = arith.constant 0 : index
    %34 = vector.load %arg6[%c0_18, %c0_19] : memref<1x32xf32, #tpu.memory_space<vmem>>, vector<1x32xf32>
    %35 = vector.broadcast %34 : vector<1x32xf32> to vector<8x32xf32>
    %36 = arith.addf %33, %35 : vector<8x32xf32>
    %37 = arith.addf %0, %36 : vector<8x32xf32>
    %c0_20 = arith.constant 0 : index
    %c0_21 = arith.constant 0 : index
    %38 = vector.load %arg17[%c0_20, %c0_21] : memref<3x32xf32, #tpu.memory_space<vmem>>, vector<1x32xf32>
    %c0_22 = arith.constant 0 : index
    %c0_23 = arith.constant 0 : index
    %39 = vector.load %arg18[%c0_22, %c0_23] : memref<3x32xf32, #tpu.memory_space<vmem>>, vector<1x32xf32>
    %cst_24 = arith.constant dense<0.000000e+00> : vector<8xf32>
    %40 = vector.multi_reduction <add>, %37, %cst_24 [1] : vector<8x32xf32> to vector<8xf32>
    %41 = vector.shape_cast %40 : vector<8xf32> to vector<8x1xf32>
    %cst_25 = arith.constant 3.200000e+01 : f32
    %42 = vector.broadcast %cst_25 : f32 to vector<8x1xf32>
    %43 = arith.divf %41, %42 : vector<8x1xf32>
    %44 = vector.broadcast %43 : vector<8x1xf32> to vector<8x32xf32>
    %45 = arith.subf %37, %44 : vector<8x32xf32>
    %46 = arith.mulf %45, %45 : vector<8x32xf32>
    %cst_26 = arith.constant dense<0.000000e+00> : vector<8xf32>
    %47 = vector.multi_reduction <add>, %46, %cst_26 [1] : vector<8x32xf32> to vector<8xf32>
    %48 = vector.shape_cast %47 : vector<8xf32> to vector<8x1xf32>
    %cst_27 = arith.constant 3.200000e+01 : f32
    %49 = vector.broadcast %cst_27 : f32 to vector<8x1xf32>
    %50 = arith.divf %48, %49 : vector<8x1xf32>
    %cst_28 = arith.constant 9.99999974E-6 : f32
    %51 = vector.broadcast %cst_28 : f32 to vector<8x1xf32>
    %52 = arith.addf %50, %51 : vector<8x1xf32>
    %53 = math.rsqrt %52 : vector<8x1xf32>
    %54 = vector.broadcast %53 : vector<8x1xf32> to vector<8x32xf32>
    %55 = arith.mulf %45, %54 : vector<8x32xf32>
    %56 = vector.broadcast %38 : vector<1x32xf32> to vector<8x32xf32>
    %57 = arith.mulf %55, %56 : vector<8x32xf32>
    %58 = vector.broadcast %39 : vector<1x32xf32> to vector<8x32xf32>
    %59 = arith.addf %57, %58 : vector<8x32xf32>
    %c0_29 = arith.constant 0 : index
    %c0_30 = arith.constant 0 : index
    %60 = vector.load %arg7[%c0_29, %c0_30] : memref<32x32xf32, #tpu.memory_space<vmem>>, vector<32x32xf32>
    %cst_31 = arith.constant dense<0.000000e+00> : vector<8x32xf32>
    %61 = tpu.matmul %59, %60, %cst_31 {dimension_numbers = #tpu.dot_dimension_numbers<[1], [0], [0], [1], [0, 0, 1, 1], [], []>} : vector<8x32xf32>, vector<32x32xf32>, vector<8x32xf32> -> vector<8x32xf32>
    %c0_32 = arith.constant 0 : index
    %c0_33 = arith.constant 0 : index
    %62 = vector.load %arg8[%c0_32, %c0_33] : memref<1x32xf32, #tpu.memory_space<vmem>>, vector<1x32xf32>
    %63 = vector.broadcast %62 : vector<1x32xf32> to vector<8x32xf32>
    %64 = arith.addf %61, %63 : vector<8x32xf32>
    %c0_34 = arith.constant 0 : index
    %c0_35 = arith.constant 0 : index
    %65 = vector.load %arg9[%c0_34, %c0_35] : memref<32x64xf32, #tpu.memory_space<vmem>>, vector<32x64xf32>
    %cst_36 = arith.constant dense<0.000000e+00> : vector<8x64xf32>
    %66 = tpu.matmul %1, %65, %cst_36 {dimension_numbers = #tpu.dot_dimension_numbers<[1], [0], [0], [1], [0, 0, 1, 1], [], []>} : vector<8x32xf32>, vector<32x64xf32>, vector<8x64xf32> -> vector<8x64xf32>
    %c0_37 = arith.constant 0 : index
    %c0_38 = arith.constant 0 : index
    %67 = vector.load %arg10[%c0_37, %c0_38] : memref<1x64xf32, #tpu.memory_space<vmem>>, vector<1x64xf32>
    %68 = vector.broadcast %67 : vector<1x64xf32> to vector<8x64xf32>
    %69 = arith.addf %66, %68 : vector<8x64xf32>
    %70 = vector.extract_strided_slice %69 {offsets = [0, 0], sizes = [8, 32], strides = [1, 1]} : vector<8x64xf32> to vector<8x32xf32>
    %71 = vector.extract_strided_slice %69 {offsets = [0, 32], sizes = [8, 32], strides = [1, 1]} : vector<8x64xf32> to vector<8x32xf32>
    %c0_39 = arith.constant 0 : index
    %c0_40 = arith.constant 0 : index
    %72 = vector.load %arg21[%c0_39, %c0_40] : memref<32x32xf32, #tpu.memory_space<vmem>>, vector<32x32xf32>
    %c0_41 = arith.constant 0 : index
    %c0_42 = arith.constant 0 : index
    %73 = vector.load %arg22[%c0_41, %c0_42] : memref<32x32xf32, #tpu.memory_space<vmem>>, vector<32x32xf32>
    %74 = vector.shape_cast %70 : vector<8x32xf32> to vector<1x8x32xf32>
    %75 = vector.shape_cast %74 : vector<1x8x32xf32> to vector<1x8x32xf32>
    %76 = vector.broadcast %75 : vector<1x8x32xf32> to vector<4x8x32xf32>
    %77 = vector.shape_cast %76 : vector<4x8x32xf32> to vector<32x32xf32>
    %78 = arith.mulf %77, %72 : vector<32x32xf32>
    %79 = vector.shape_cast %71 : vector<8x32xf32> to vector<1x8x32xf32>
    %80 = vector.shape_cast %79 : vector<1x8x32xf32> to vector<1x8x32xf32>
    %81 = vector.broadcast %80 : vector<1x8x32xf32> to vector<4x8x32xf32>
    %82 = vector.shape_cast %81 : vector<4x8x32xf32> to vector<32x32xf32>
    %83 = arith.mulf %82, %72 : vector<32x32xf32>
    %cst_43 = arith.constant dense<0.000000e+00> : vector<8x32xf32>
    %84 = tpu.matmul %64, %78, %cst_43 {dimension_numbers = #tpu.dot_dimension_numbers<[1], [1], [0], [0], [0, 0, 1, 0], [], []>} : vector<8x32xf32>, vector<32x32xf32>, vector<8x32xf32> -> vector<8x32xf32>
    %cst_44 = arith.constant dense<0xFF800000> : vector<8xf32>
    %85 = vector.multi_reduction <maximumf>, %84, %cst_44 [1] : vector<8x32xf32> to vector<8xf32>
    %86 = vector.shape_cast %85 : vector<8xf32> to vector<8x1xf32>
    %87 = vector.broadcast %86 : vector<8x1xf32> to vector<8x32xf32>
    %88 = arith.subf %84, %87 : vector<8x32xf32>
    %89 = math.exp %88 : vector<8x32xf32>
    %cst_45 = arith.constant dense<0.000000e+00> : vector<8x32xf32>
    %90 = tpu.matmul %89, %73, %cst_45 {dimension_numbers = #tpu.dot_dimension_numbers<[1], [0], [0], [1], [0, 0, 1, 1], [], []>} : vector<8x32xf32>, vector<32x32xf32>, vector<8x32xf32> -> vector<8x32xf32>
    %91 = tpu.reciprocal %90 : vector<8x32xf32> -> vector<8x32xf32>
    %92 = arith.mulf %89, %91 : vector<8x32xf32>
    %cst_46 = arith.constant dense<0.000000e+00> : vector<8x32xf32>
    %93 = tpu.matmul %92, %83, %cst_46 {dimension_numbers = #tpu.dot_dimension_numbers<[1], [0], [0], [1], [0, 0, 1, 1], [], []>} : vector<8x32xf32>, vector<32x32xf32>, vector<8x32xf32> -> vector<8x32xf32>
    %c0_47 = arith.constant 0 : index
    %c0_48 = arith.constant 0 : index
    %94 = vector.load %arg11[%c0_47, %c0_48] : memref<32x32xf32, #tpu.memory_space<vmem>>, vector<32x32xf32>
    %cst_49 = arith.constant dense<0.000000e+00> : vector<8x32xf32>
    %95 = tpu.matmul %93, %94, %cst_49 {dimension_numbers = #tpu.dot_dimension_numbers<[1], [0], [0], [1], [0, 0, 1, 1], [], []>} : vector<8x32xf32>, vector<32x32xf32>, vector<8x32xf32> -> vector<8x32xf32>
    %c0_50 = arith.constant 0 : index
    %c0_51 = arith.constant 0 : index
    %96 = vector.load %arg12[%c0_50, %c0_51] : memref<1x32xf32, #tpu.memory_space<vmem>>, vector<1x32xf32>
    %97 = vector.broadcast %96 : vector<1x32xf32> to vector<8x32xf32>
    %98 = arith.addf %95, %97 : vector<8x32xf32>
    %99 = arith.addf %59, %98 : vector<8x32xf32>
    %c1 = arith.constant 1 : index
    %c0_52 = arith.constant 0 : index
    %100 = vector.load %arg17[%c1, %c0_52] : memref<3x32xf32, #tpu.memory_space<vmem>>, vector<1x32xf32>
    %c1_53 = arith.constant 1 : index
    %c0_54 = arith.constant 0 : index
    %101 = vector.load %arg18[%c1_53, %c0_54] : memref<3x32xf32, #tpu.memory_space<vmem>>, vector<1x32xf32>
    %cst_55 = arith.constant dense<0.000000e+00> : vector<8xf32>
    %102 = vector.multi_reduction <add>, %99, %cst_55 [1] : vector<8x32xf32> to vector<8xf32>
    %103 = vector.shape_cast %102 : vector<8xf32> to vector<8x1xf32>
    %cst_56 = arith.constant 3.200000e+01 : f32
    %104 = vector.broadcast %cst_56 : f32 to vector<8x1xf32>
    %105 = arith.divf %103, %104 : vector<8x1xf32>
    %106 = vector.broadcast %105 : vector<8x1xf32> to vector<8x32xf32>
    %107 = arith.subf %99, %106 : vector<8x32xf32>
    %108 = arith.mulf %107, %107 : vector<8x32xf32>
    %cst_57 = arith.constant dense<0.000000e+00> : vector<8xf32>
    %109 = vector.multi_reduction <add>, %108, %cst_57 [1] : vector<8x32xf32> to vector<8xf32>
    %110 = vector.shape_cast %109 : vector<8xf32> to vector<8x1xf32>
    %cst_58 = arith.constant 3.200000e+01 : f32
    %111 = vector.broadcast %cst_58 : f32 to vector<8x1xf32>
    %112 = arith.divf %110, %111 : vector<8x1xf32>
    %cst_59 = arith.constant 9.99999974E-6 : f32
    %113 = vector.broadcast %cst_59 : f32 to vector<8x1xf32>
    %114 = arith.addf %112, %113 : vector<8x1xf32>
    %115 = math.rsqrt %114 : vector<8x1xf32>
    %116 = vector.broadcast %115 : vector<8x1xf32> to vector<8x32xf32>
    %117 = arith.mulf %107, %116 : vector<8x32xf32>
    %118 = vector.broadcast %100 : vector<1x32xf32> to vector<8x32xf32>
    %119 = arith.mulf %117, %118 : vector<8x32xf32>
    %120 = vector.broadcast %101 : vector<1x32xf32> to vector<8x32xf32>
    %121 = arith.addf %119, %120 : vector<8x32xf32>
    %c0_60 = arith.constant 0 : index
    %c0_61 = arith.constant 0 : index
    %122 = vector.load %arg13[%c0_60, %c0_61] : memref<32x128xf32, #tpu.memory_space<vmem>>, vector<32x128xf32>
    %cst_62 = arith.constant dense<0.000000e+00> : vector<8x128xf32>
    %123 = tpu.matmul %121, %122, %cst_62 {dimension_numbers = #tpu.dot_dimension_numbers<[1], [0], [0], [1], [0, 0, 1, 1], [], []>} : vector<8x32xf32>, vector<32x128xf32>, vector<8x128xf32> -> vector<8x128xf32>
    %c0_63 = arith.constant 0 : index
    %c0_64 = arith.constant 0 : index
    %124 = vector.load %arg14[%c0_63, %c0_64] : memref<1x128xf32, #tpu.memory_space<vmem>>, vector<1x128xf32>
    %125 = vector.broadcast %124 : vector<1x128xf32> to vector<8x128xf32>
    %126 = arith.addf %123, %125 : vector<8x128xf32>
    %cst_65 = arith.constant 0.000000e+00 : f32
    %127 = vector.broadcast %cst_65 : f32 to vector<8x128xf32>
    %128 = arith.maximumf %126, %127 : vector<8x128xf32>
    %c0_66 = arith.constant 0 : index
    %c0_67 = arith.constant 0 : index
    %129 = vector.load %arg15[%c0_66, %c0_67] : memref<128x32xf32, #tpu.memory_space<vmem>>, vector<128x32xf32>
    %cst_68 = arith.constant dense<0.000000e+00> : vector<8x32xf32>
    %130 = tpu.matmul %128, %129, %cst_68 {dimension_numbers = #tpu.dot_dimension_numbers<[1], [0], [0], [1], [0, 0, 1, 1], [], []>} : vector<8x128xf32>, vector<128x32xf32>, vector<8x32xf32> -> vector<8x32xf32>
    %c0_69 = arith.constant 0 : index
    %c0_70 = arith.constant 0 : index
    %131 = vector.load %arg16[%c0_69, %c0_70] : memref<1x32xf32, #tpu.memory_space<vmem>>, vector<1x32xf32>
    %132 = vector.broadcast %131 : vector<1x32xf32> to vector<8x32xf32>
    %133 = arith.addf %130, %132 : vector<8x32xf32>
    %134 = arith.addf %121, %133 : vector<8x32xf32>
    %c2 = arith.constant 2 : index
    %c0_71 = arith.constant 0 : index
    %135 = vector.load %arg17[%c2, %c0_71] : memref<3x32xf32, #tpu.memory_space<vmem>>, vector<1x32xf32>
    %c2_72 = arith.constant 2 : index
    %c0_73 = arith.constant 0 : index
    %136 = vector.load %arg18[%c2_72, %c0_73] : memref<3x32xf32, #tpu.memory_space<vmem>>, vector<1x32xf32>
    %cst_74 = arith.constant dense<0.000000e+00> : vector<8xf32>
    %137 = vector.multi_reduction <add>, %134, %cst_74 [1] : vector<8x32xf32> to vector<8xf32>
    %138 = vector.shape_cast %137 : vector<8xf32> to vector<8x1xf32>
    %cst_75 = arith.constant 3.200000e+01 : f32
    %139 = vector.broadcast %cst_75 : f32 to vector<8x1xf32>
    %140 = arith.divf %138, %139 : vector<8x1xf32>
    %141 = vector.broadcast %140 : vector<8x1xf32> to vector<8x32xf32>
    %142 = arith.subf %134, %141 : vector<8x32xf32>
    %143 = arith.mulf %142, %142 : vector<8x32xf32>
    %cst_76 = arith.constant dense<0.000000e+00> : vector<8xf32>
    %144 = vector.multi_reduction <add>, %143, %cst_76 [1] : vector<8x32xf32> to vector<8xf32>
    %145 = vector.shape_cast %144 : vector<8xf32> to vector<8x1xf32>
    %cst_77 = arith.constant 3.200000e+01 : f32
    %146 = vector.broadcast %cst_77 : f32 to vector<8x1xf32>
    %147 = arith.divf %145, %146 : vector<8x1xf32>
    %cst_78 = arith.constant 9.99999974E-6 : f32
    %148 = vector.broadcast %cst_78 : f32 to vector<8x1xf32>
    %149 = arith.addf %147, %148 : vector<8x1xf32>
    %150 = math.rsqrt %149 : vector<8x1xf32>
    %151 = vector.broadcast %150 : vector<8x1xf32> to vector<8x32xf32>
    %152 = arith.mulf %142, %151 : vector<8x32xf32>
    %153 = vector.broadcast %135 : vector<1x32xf32> to vector<8x32xf32>
    %154 = arith.mulf %152, %153 : vector<8x32xf32>
    %155 = vector.broadcast %136 : vector<1x32xf32> to vector<8x32xf32>
    %156 = arith.addf %154, %155 : vector<8x32xf32>
    %c0_79 = arith.constant 0 : index
    %c0_80 = arith.constant 0 : index
    %157 = vector.load %arg23[%c0_79, %c0_80] : memref<8x32xf32, #tpu.memory_space<vmem>>, vector<8x32xf32>
    tpu.vector_store %arg23[%c0_79, %c0_80], %156 {strides = array<i32>} : memref<8x32xf32, #tpu.memory_space<vmem>>, vector<8x32xf32>,
    return
  }
  func.func @transform_0(%arg0: i32) -> (i32, i32) {
    %c0_i32 = arith.constant 0 : i32
    %c0_i32_0 = arith.constant 0 : i32
    return %arg0, %c0_i32 : i32, i32
  }
  func.func @transform_1(%arg0: i32) -> (i32, i32) {
    %c0_i32 = arith.constant 0 : i32
    %c0_i32_0 = arith.constant 0 : i32
    return %arg0, %c0_i32 : i32, i32
  }
  func.func @transform_2(%arg0: i32) -> (i32, i32) {
    %c0_i32 = arith.constant 0 : i32
    %c0_i32_0 = arith.constant 0 : i32
    %c0_i32_1 = arith.constant 0 : i32
    return %c0_i32, %c0_i32_0 : i32, i32
  }
  func.func @transform_3(%arg0: i32) -> (i32, i32) {
    %c0_i32 = arith.constant 0 : i32
    %c0_i32_0 = arith.constant 0 : i32
    %c0_i32_1 = arith.constant 0 : i32
    return %c0_i32, %c0_i32_0 : i32, i32
  }
  func.func @transform_4(%arg0: i32) -> (i32, i32) {
    %c0_i32 = arith.constant 0 : i32
    %c0_i32_0 = arith.constant 0 : i32
    %c0_i32_1 = arith.constant 0 : i32
    return %c0_i32, %c0_i32_0 : i32, i32
  }
  func.func @transform_5(%arg0: i32) -> (i32, i32) {
    %c0_i32 = arith.constant 0 : i32
    %c0_i32_0 = arith.constant 0 : i32
    %c0_i32_1 = arith.constant 0 : i32
    return %c0_i32, %c0_i32_0 : i32, i32
  }
  func.func @transform_6(%arg0: i32) -> (i32, i32) {
    %c0_i32 = arith.constant 0 : i32
    %c0_i32_0 = arith.constant 0 : i32
    %c0_i32_1 = arith.constant 0 : i32
    return %c0_i32, %c0_i32_0 : i32, i32
  }
  func.func @transform_7(%arg0: i32) -> (i32, i32) {
    %c0_i32 = arith.constant 0 : i32
    %c0_i32_0 = arith.constant 0 : i32
    %c0_i32_1 = arith.constant 0 : i32
    return %c0_i32, %c0_i32_0 : i32, i32
  }
  func.func @transform_8(%arg0: i32) -> (i32, i32) {
    %c0_i32 = arith.constant 0 : i32
    %c0_i32_0 = arith.constant 0 : i32
    %c0_i32_1 = arith.constant 0 : i32
    return %c0_i32, %c0_i32_0 : i32, i32
  }
  func.func @transform_9(%arg0: i32) -> (i32, i32) {
    %c0_i32 = arith.constant 0 : i32
    %c0_i32_0 = arith.constant 0 : i32
    %c0_i32_1 = arith.constant 0 : i32
    return %c0_i32, %c0_i32_0 : i32, i32
  }
  func.func @transform_10(%arg0: i32) -> (i32, i32) {
    %c0_i32 = arith.constant 0 : i32
    %c0_i32_0 = arith.constant 0 : i32
    %c0_i32_1 = arith.constant 0 : i32
    return %c0_i32, %c0_i32_0 : i32, i32
  }
  func.func @transform_11(%arg0: i32) -> (i32, i32) {
    %c0_i32 = arith.constant 0 : i32
    %c0_i32_0 = arith.constant 0 : i32
    %c0_i32_1 = arith.constant 0 : i32
    return %c0_i32, %c0_i32_0 : i32, i32
  }
  func.func @transform_12(%arg0: i32) -> (i32, i32) {
    %c0_i32 = arith.constant 0 : i32
    %c0_i32_0 = arith.constant 0 : i32
    %c0_i32_1 = arith.constant 0 : i32
    return %c0_i32, %c0_i32_0 : i32, i32
  }
  func.func @transform_13(%arg0: i32) -> (i32, i32) {
    %c0_i32 = arith.constant 0 : i32
    %c0_i32_0 = arith.constant 0 : i32
    %c0_i32_1 = arith.constant 0 : i32
    return %c0_i32, %c0_i32_0 : i32, i32
  }
  func.func @transform_14(%arg0: i32) -> (i32, i32) {
    %c0_i32 = arith.constant 0 : i32
    %c0_i32_0 = arith.constant 0 : i32
    %c0_i32_1 = arith.constant 0 : i32
    return %c0_i32, %c0_i32_0 : i32, i32
  }
  func.func @transform_15(%arg0: i32) -> (i32, i32) {
    %c0_i32 = arith.constant 0 : i32
    %c0_i32_0 = arith.constant 0 : i32
    %c0_i32_1 = arith.constant 0 : i32
    return %c0_i32, %c0_i32_0 : i32, i32
  }
  func.func @transform_16(%arg0: i32) -> (i32, i32) {
    %c0_i32 = arith.constant 0 : i32
    %c0_i32_0 = arith.constant 0 : i32
    %c0_i32_1 = arith.constant 0 : i32
    return %c0_i32, %c0_i32_0 : i32, i32
  }
  func.func @transform_17(%arg0: i32) -> (i32, i32) {
    %c0_i32 = arith.constant 0 : i32
    %c0_i32_0 = arith.constant 0 : i32
    %c0_i32_1 = arith.constant 0 : i32
    return %c0_i32, %c0_i32_0 : i32, i32
  }
  func.func @transform_18(%arg0: i32) -> (i32, i32) {
    %c0_i32 = arith.constant 0 : i32
    %c0_i32_0 = arith.constant 0 : i32
    %c0_i32_1 = arith.constant 0 : i32
    return %c0_i32, %c0_i32_0 : i32, i32
  }
  func.func @transform_19(%arg0: i32) -> (i32, i32) {
    %c0_i32 = arith.constant 0 : i32
    %c0_i32_0 = arith.constant 0 : i32
    %c0_i32_1 = arith.constant 0 : i32
    return %c0_i32, %c0_i32_0 : i32, i32
  }
  func.func @transform_20(%arg0: i32) -> (i32, i32) {
    %c0_i32 = arith.constant 0 : i32
    %c0_i32_0 = arith.constant 0 : i32
    %c0_i32_1 = arith.constant 0 : i32
    return %c0_i32, %c0_i32_0 : i32, i32
  }
  func.func @transform_21(%arg0: i32) -> (i32, i32) {
    %c0_i32 = arith.constant 0 : i32
    %c0_i32_0 = arith.constant 0 : i32
    %c0_i32_1 = arith.constant 0 : i32
    return %c0_i32, %c0_i32_0 : i32, i32
  }
  func.func @transform_22(%arg0: i32) -> (i32, i32) {
    %c0_i32 = arith.constant 0 : i32
    %c0_i32_0 = arith.constant 0 : i32
    return %arg0, %c0_i32 : i32, i32
  }
}

</mosaic_0001>

<bundles_post_ra>
// kernel: tpu_custom_call.1
= control target key start
LH: loop header
LB: loop body
LE: loop exit
PB: predicated region body
PF: predicated region fallthrough
CT: control target
= control target key end

     0   :  { %s2970_s0 = inlined_call_operand.hbm [shape: f32[16,32], index: 0, kind: input, shape index: {}]   ;;  %s2971_s1 = inlined_call_operand.hbm [shape: f32[16,32], index: 1, kind: input, shape index: {}]   ;;  %s2972_s2 = inlined_call_operand.vmem [shape: f32[32,96], index: 2, kind: input, shape index: {}]   ;;  %s2973_s3 = inlined_call_operand.vmem [shape: f32[1,96], index: 3, kind: input, shape index: {}]   ;;  %s2974_s4 = inlined_call_operand.vmem [shape: f32[32,32], index: 4, kind: input, shape index: {}]   ;;  %s2975_s5 = inlined_call_operand.hbm [shape: f32[1,32], index: 5, kind: input, shape index: {}]   ;;  %s2976_s6 = inlined_call_operand.vmem [shape: f32[32,32], index: 6, kind: input, shape index: {}]   ;;  %s2977_s7 = inlined_call_operand.hbm [shape: f32[1,32], index: 7, kind: input, shape index: {}]   ;;  %s2978_s8 = inlined_call_operand.vmem [shape: f32[32,64], index: 8, kind: input, shape index: {}]   ;;  %s2979_s9 = inlined_call_operand.hbm [shape: f32[1,64], index: 9, kind: input, shape index: {}]   ;;  %s2980_s10 = inlined_call_operand.vmem [shape: f32[32,32], index: 10, kind: input, shape index: {}]   ;;  %s2981_s11 = inlined_call_operand.hbm [shape: f32[1,32], index: 11, kind: input, shape index: {}]   ;;  %s2982_s12 = inlined_call_operand.hbm [shape: f32[32,128], index: 12, kind: input, shape index: {}]   ;;  %s2983_s13 = inlined_call_operand.vmem [shape: f32[1,128], index: 13, kind: input, shape index: {}]   ;;  %s2984_s14 = inlined_call_operand.vmem [shape: f32[128,32], index: 14, kind: input, shape index: {}]   ;;  %s2985_s15 = inlined_call_operand.vmem [shape: f32[1,32], index: 15, kind: input, shape index: {}]   ;;  %s2986_s16 = inlined_call_operand.vmem [shape: f32[3,32], index: 16, kind: input, shape index: {}]   ;;  %s2987_s17 = inlined_call_operand.vmem [shape: f32[3,32], index: 17, kind: input, shape index: {}]   ;;  %s2988_s18 = inlined_call_operand.hbm [shape: f32[32,32], index: 18, kind: input, shape index: {}]   ;;  %s2989_s19 = inlined_call_operand.hbm [shape: f32[32,32], index: 19, kind: input, shape index: {}]   ;;  %s2990_s20 = inlined_call_operand.hbm [shape: f32[32,32], index: 20, kind: input, shape index: {}]   ;;  %s2991_s21 = inlined_call_operand.hbm [shape: f32[32,32], index: 21, kind: input, shape index: {}]   ;;  %s2992_s22 = inlined_call_operand.hbm [shape: f32[16,32], index: 22, kind: output, shape index: {}]  }
   0x1   :  { %3004 = sst [smem:[#allocation32_spill]] %s2970_s0 }
   0x2   :  { %3005 = sst [smem:[#allocation33_spill]] %s2971_s1 }
   0x3   :  { %3006 = sst [smem:[#allocation34_spill]] %s2972_s2 }
   0x4   :  { %3007 = sst [smem:[#allocation35_spill]] %s2973_s3 }
   0x5   :  { %3008 = sst [smem:[#allocation36_spill]] %s2974_s4 }
   0x6   :  { %3009 = sst [smem:[#allocation37_spill]] %s2975_s5 }
   0x7   :  { %3010 = sst [smem:[#allocation38_spill]] %s2976_s6 }
   0x8   :  { %3011 = sst [smem:[#allocation39_spill]] %s2977_s7 }
   0x9   :  { %3012 = sst [smem:[#allocation40_spill]] %s2979_s9 }
   0xa   :  { %3013 = sst [smem:[#allocation41_spill]] %s2980_s10 }
   0xb   :  { %3014 = sst [smem:[#allocation42_spill]] %s2981_s11 }
   0xc   :  { %3015 = sst [smem:[#allocation43_spill]] %s2982_s12 }
   0xd   :  { %3016 = sst [smem:[#allocation44_spill]] %s2983_s13 }
   0xe   :  { %3017 = sst [smem:[#allocation45_spill]] %s2984_s14 }
   0xf   :  { %3018 = sst [smem:[#allocation46_spill]] %s2985_s15 }
  0x10   :  { %3019 = sst [smem:[#allocation47_spill]] %s2988_s18 }
  0x11   :  { %3020 = sst [smem:[#allocation48_spill]] %s2989_s19 }
  0x12   :  { %3021 = sst [smem:[#allocation49_spill]] %s2990_s20 }
  0x13   :  { %3022 = sst [smem:[#allocation50_spill]] %s2991_s21 }
  0x14   :  { %3023 = sst [smem:[#allocation51_spill]] %s2992_s22 }
  0x15   :  { %27 = vsyncpa [#allocation3], 0 }
  0x16   :  { %29 = vsyncpa [#allocation3 + $0x1], 0 }
  0x17   :  { %30 = vsyncpa [#allocation6], 0 }
  0x18   :  { %32 = vsyncpa [#allocation6 + $0x1], 0 }
  0x19   :  { %33 = vsyncpa [#allocation9], 0 }
  0x1a   :  { %34 = vsyncpa [#allocation12], 0 }
  0x1b   :  { %35 = vsyncpa [#allocation15], 0 }
  0x1c   :  { %36 = vsyncpa [#allocation18], 0 }
  0x1d   :  { %37 = vsyncpa [#allocation4], 0 }
  0x1e   :  { %39 = vsyncpa [#allocation4 + $0x1], 0  ;;  %s2521_s3 = smov 0   ;;  %s2523_s28 = smov 0  }
  0x1f   :  { %s2525_s29 = smov 0   ;;  %s2527_s30 = smov 0  }
  0x20 LB: > { %3024 = sst [smem:[#allocation29_spill]] %s2385_s29  ;;  %s2545_s5 = sadd.s32 4294967295, %s2389_s30   ;;  %s2389_s30 = sphi %s2527_s30, %s3055_s30   ;;  %s2385_s29 = sphi %s2525_s29, %s3057_s29   ;;  %s2381_s28 = sphi %s2523_s28, %s3059_s28   ;;  %s2377_s3 = sphi %s2521_s3, %s3058_s3  }
  0x21   : > { %s3025_s23 = sld [smem:[#allocation37_spill]]  ;;  %p1720_p0 = scmp.ge.s32.totalorder %s2389_s30, 1 }
  0x22   : > { %p66_p1 = scmp.eq.s32.totalorder %s2545_s5, 0  ;;  %p548_p2 = scmp.lt.s32.totalorder %s2389_s30, 3 }
  0x23   : > { %s2391_s6 = smov [#allocation7]   ;;  %s3027_s7 = sld [smem:[#allocation39_spill]] }
  0x24   : > { %p2550_p3 = pnand %p1720_p0, %p548_p2  ;;  %s571_s25 = sshll.u32 %s2391_s6, 4  ;;  %s572_s25 = int_to_ptr.vmem [resolvable:$true] %s571_s25 }
  0x25   : > { %s2392_s0 = smov [#allocation8]   ;;  %s3029_s11 = sld [smem:[#allocation42_spill]] }
  0x26   : > { %p1814_p5 = pneg %p2550_p3  ;;  %s2393_s26 = smov [#allocation11]  }
  0x27   : > { %s569_s1 = sshll.u32 %s3025_s23, 4  ;;  %s586_s23 = sshll.u32 %s2392_s0, 4  ;;  %s570_s1 = int_to_ptr.hbm [resolvable:$true] %s569_s1  ;;  %s587_s23 = int_to_ptr.vmem [resolvable:$true] %s586_s23 }
  0x28   : > { %p2562_p6 = pnand %p1814_p5, %p66_p1  ;;  %s616_s2 = sshll.u32 %s2393_s26, 4  ;;  %s617_s2 = int_to_ptr.vmem [resolvable:$true] %s616_s2 }
  0x29   : > { %s584_s27 = sshll.u32 %s3027_s7, 4  ;;  %s3030_s18 = sld [smem:[#allocation47_spill]]  ;;  %s585_s27 = int_to_ptr.hbm [resolvable:$true] %s584_s27 }
  0x2a   : > { %1817 = dma.hbm_to_vmem [thread:$0]  (!%p2562_p6), %s570_s1, 16, %s572_s25, [#allocation6]  }
  0x2b   : > { %s614_s15 = sshll.u32 %s3029_s11, 4  ;;  %s2394_s0 = smov [#allocation14]   ;;  %s615_s15 = int_to_ptr.hbm [resolvable:$true] %s614_s15 }
  0x2c   : > { %1820 = dma.hbm_to_vmem [thread:$0]  (!%p2562_p6), %s585_s27, 16, %s587_s23, [#allocation9]  }
  0x2d   : > { %1826 = dma.hbm_to_vmem [thread:$0]  (!%p2562_p6), %s615_s15, 16, %s617_s2, [#allocation12]  }
  0x2e   : > { %s656_s22 = sshll.u32 %s2394_s0, 4  ;;  %s3031_s20 = sld [smem:[#allocation49_spill]]  ;;  %s657_s22 = int_to_ptr.vmem [resolvable:$true] %s656_s22 }
  0x2f   : > { %s654_s14 = sshll.u32 %s3030_s18, 4  ;;  %s2395_s1 = smov 128   ;;  %s655_s14 = int_to_ptr.hbm [resolvable:$true] %s654_s14 }
  0x30   : > { %s2396_s25 = smov 8   ;;  %s3032_s9 = sld [smem:[#allocation40_spill]] }
  0x31   : > { %1832 = dma.hbm_to_vmem [thread:$0]  (!%p2562_p6), %s655_s14, 512, %s657_s22, [#allocation15], %s2395_s1, %s2395_s1, %s2396_s25  }
  0x32   : > { %s2397_s27 = smov [#allocation17]   ;;  %s2398_s11 = smov [#allocation10]  }
  0x33   : > { %s684_s23 = sshll.u32 %s2397_s27, 4  ;;  %s601_s26 = sshll.u32 %s2398_s11, 4  ;;  %s685_s23 = int_to_ptr.vmem [resolvable:$true] %s684_s23  ;;  %s602_s26 = int_to_ptr.vmem [resolvable:$true] %s601_s26 }
  0x34   : > { %s682_s10 = sshll.u32 %s3031_s20, 4  ;;  %s3033_s12 = sld [smem:[#allocation43_spill]]  ;;  %s683_s10 = int_to_ptr.hbm [resolvable:$true] %s682_s10 }
  0x35   : > { %1838 = dma.hbm_to_vmem [thread:$0]  (!%p2562_p6), %s683_s10, 512, %s685_s23, [#allocation18], %s2395_s1, %s2395_s1, %s2396_s25  }
  0x36   : > { %s599_s15 = sshll.u32 %s3032_s9, 4  ;;  %s3034_s19 = sld [smem:[#allocation48_spill]]  ;;  %s600_s15 = int_to_ptr.hbm [resolvable:$true] %s599_s15 }
  0x37   : > { %1823 = dma.hbm_to_vmem [thread:$0]  (!%p2562_p6), %s600_s15, 16, %s602_s26, [#allocation9]  }
  0x38   : > { %s2399_s13 = smov [#allocation13]   ;;  %s2400_s15 = smov [#allocation16]  }
  0x39   : > { %s627_s10 = sshll.u32 %s2399_s13, 4  ;;  %s670_s27 = sshll.u32 %s2400_s15, 4  ;;  %s628_s10 = int_to_ptr.vmem [resolvable:$true] %s627_s10  ;;  %s671_s27 = int_to_ptr.vmem [resolvable:$true] %s670_s27 }
  0x3a   : > { %s625_s14 = sshll.u32 %s3033_s12, 4  ;;  %s3035_s21 = sld [smem:[#allocation50_spill]]  ;;  %s626_s14 = int_to_ptr.hbm [resolvable:$true] %s625_s14 }
  0x3b   : > { %1829 = dma.hbm_to_vmem [thread:$0]  (!%p2562_p6), %s626_s14, 512, %s628_s10, [#allocation12], %s2395_s1, %s2395_s1, %s2396_s25  }
  0x3c   : > { %s668_s7 = sshll.u32 %s3034_s19, 4  ;;  %s2401_s2 = smov [#allocation19]   ;;  %s669_s7 = int_to_ptr.hbm [resolvable:$true] %s668_s7 }
  0x3d   : > { %1835 = dma.hbm_to_vmem [thread:$0]  (!%p2562_p6), %s669_s7, 512, %s671_s27, [#allocation15], %s2395_s1, %s2395_s1, %s2396_s25  }
  0x3e   : > { %s698_s0 = sshll.u32 %s2401_s2, 4  ;;  %s1719_s14 = sadd.s32 4294967294, %s2389_s30   ;;  %s699_s0 = int_to_ptr.vmem [resolvable:$true] %s698_s0 }
  0x3f   : > { %s2622_s22 = sadd.s32 1, %s2389_s30   ;;  %s52_s6 = sadd.s32 1, %s2385_s29 }
  0x40   : > { %s696_s26 = sshll.u32 %s3035_s21, 4  ;;  %3036 = sst [smem:[#allocation30_spill]] %s2622_s22  ;;  %s697_s26 = int_to_ptr.hbm [resolvable:$true] %s696_s26 }
  0x41   : > { %1841 = dma.hbm_to_vmem [thread:$0]  (!%p2562_p6), %s697_s26, 512, %s699_s0, [#allocation18], %s2395_s1, %s2395_s1, %s2396_s25  }
  0x42   : > { %s49_s13 = ssub.s32 %s2389_s30, %s2622_s22  ;;  %p59_p7 = scmp.ne.s32.totalorder %s2385_s29, %s2381_s28 }
  0x43   : > { %p50_p8 = scmp.eq.s32.totalorder %s49_s13, 0  ;;  %p60_p9 = scmp.eq.s32.totalorder %s2389_s30, 0 }
  0x44   : > { %p65_p10 = scmp.ne.s32.totalorder %s2381_s28, %s2377_s3  ;;  %p535_p11 = scmp.eq.s32.totalorder %s2545_s5, 1 }
  0x45   : > { %s2634_s7 = scalar_select %p50_p8, %s2385_s29, %s52_s6  }
  0x46   : > { %p2636_p12 = por %p60_p9, %p59_p7  ;;  %p2642_p13 = por %p66_p1, %p65_p10 }
  0x47   : > { %3037 = sst [smem:[#allocation31_spill]] %s2634_s7  ;;  %p2646_p0 = por %p535_p11, %p59_p7 }
  0x48   : > { %p541_p2 = scmp.eq.s32.totalorder %s1719_s14, 1  ;;  %p1862_p5 = scmp.lt.s32.totalorder %s2389_s30, 2 }
  0x49   : > { %s712_s10 = sand.u32 1, %s2385_s29   ;;  %s1732_s23 = sshll.u32 %s2389_s30, 3 }
  0x4a   : > { %p2652_p6 = por %p541_p2, %p65_p10  ;;  %s1731_s27 = sshll.u32 %s712_s10, 3 }
  0x4b   : > { %s3042_s2 = sld [smem:[#allocation32_spill]]  ;;  %s716_s13 = scalar_lea.vmem [#allocation2], %s1731_s27 }
  0x4c   : > { %s724_s9 = sshll.u32 %s716_s13, 4  ;;  %p2662_p7 = pnand %p1862_p5, %p2636_p12  ;;  %s725_s9 = int_to_ptr.vmem [resolvable:$true] %s724_s9 }
  0x4d   : > { %s3044_s19 = sld [smem:[#allocation33_spill]]  ;;  %s731_s21 = sand.u32 1, %s2389_s30  }
  0x4e   : > { %s713_s7 = scalar_lea.sflag [#allocation3], %s712_s10  ;;  %p2243_p9 = pneg %p2662_p7 }
  0x51   : > { %s720_s0 = scalar_lea.hbm %s3042_s2, %s1732_s23  ;;  %s2246_s13 = scalar_lea.hbm %s3042_s2, 16 }
  0x52   : > { %s722_s6 = sshll.u32 %s720_s0, 4  ;;  %s723_s6 = int_to_ptr.hbm [resolvable:$true] %s722_s6 }
  0x53   : > { %s739_s20 = scalar_lea.hbm %s3044_s19, %s1732_s23  ;;  %s2239_s11 = sshra.s32 %s723_s6, 4  ;;  %s2240_s11 = int_to_ptr.hbm [resolvable:$true] %s2239_s11 }
  0x54   : > { %s2241_s26 = scalar_lea.hbm %s2240_s11, 8  ;;  %p2247_p12 = scmp.lt.s32.totalorder %s2240_s11, %s3042_s2 }
  0x55   : > { %p2242_p8 = scmp.ne.s32.totalorder %s2240_s11, %s2241_s26  ;;  %p2248_p2 = scmp.lt.s32.totalorder %s2246_s13, %s2241_s26 }
  0x57   : > { %p2244_p10 = pnand %p2243_p9, %p2242_p8  ;;  %p2249_p5 = por %p2248_p2, %p2247_p12 }
  0x59   : > { %p2245_p11 = pneg %p2244_p10 }
  0x5b   : > { %p2250_p4 = pnand %p2249_p5, %p2245_p11 }
  0x5d   : > { %2253 = shalt.err (!%p2250_p4)
}
  0x5e   : > { %1845 = dma.hbm_to_vmem [thread:$0]  (!%p2662_p7), %s723_s6, 128, %s725_s9, %s713_s7  }
  0x5f   : > { %s741_s10 = sshll.u32 %s739_s20, 4  ;;  %s735_s23 = scalar_lea.vmem [#allocation5], %s1731_s27  ;;  %s742_s10 = int_to_ptr.hbm [resolvable:$true] %s741_s10 }
  0x60   : > { %s743_s29 = sshll.u32 %s735_s23, 4  ;;  %s732_s22 = scalar_lea.sflag [#allocation6], %s731_s21  ;;  %s744_s29 = int_to_ptr.vmem [resolvable:$true] %s743_s29 }
  0x61   : > { %s2269_s4 = sshra.s32 %s742_s10, 4  ;;  %s2276_s13 = scalar_lea.hbm %s3044_s19, 16  ;;  %s2270_s4 = int_to_ptr.hbm [resolvable:$true] %s2269_s4 }
  0x62   : > { %s2271_s0 = scalar_lea.hbm %s2270_s4, 8  ;;  %p2277_p4 = scmp.lt.s32.totalorder %s2270_s4, %s3044_s19 }
  0x63   : > { %p2272_p8 = scmp.ne.s32.totalorder %s2270_s4, %s2271_s0  ;;  %p2278_p11 = scmp.lt.s32.totalorder %s2276_s13, %s2271_s0 }
  0x65   : > { %p2274_p10 = pnand %p2272_p8, %p2243_p9  ;;  %p2279_p2 = por %p2278_p11, %p2277_p4 }
  0x67   : > { %p2275_p12 = pneg %p2274_p10 }
  0x69   : > { %p2280_p5 = pnand %p2279_p2, %p2275_p12 }
  0x6b   : > { %2283 = shalt.err (!%p2280_p5)
}
  0x6c   : > { %1848 = dma.hbm_to_vmem [thread:$0]  (!%p2662_p7), %s742_s10, 128, %s744_s29, %s732_s22  }
  0x6d   : > { %752 = sbr.rel (%p2550_p3) target bundleno = 2929 (0xb71), region = 108  ;;  %s2697_s20 = sand.u32 (!%p2550_p3), 1, %s2381_s28  }
  0x6e   : > { %s2700_s21 = sshll.u32 (!%p2550_p3), %s2697_s20, 3  ;;  %s755_s7 = scalar_lea.sflag (!%p2550_p3), [#allocation3], %s2697_s20 }
  0x6f   : > { %s758_s27 = scalar_lea.vmem (!%p2550_p3), [#allocation2], %s2700_s21 }
  0x72   : > { %2344 = dma.done.wait (%p2642_p13), %s755_s7, 128  }
  0x73   : > { %2346 = vsyncadd (%p2642_p13), %s755_s7, 4294967168  ;;  %s764_s29 = sand.u32 1, %s2545_s5   ;;  %s768_s22 = scalar_lea.vmem [#allocation5], %s2700_s21 }
  0x74   : > { %s765_s24 = scalar_lea.sflag [#allocation6], %s764_s29 }
  0x75   : > { %2348 = dma.done.wait (%p2642_p13), %s765_s24, 128  }
  0x76   : > { %2350 = vsyncadd (%p2642_p13), %s765_s24, 4294967168 }
  0x77   : > { %2352 = dma.done.wait (%p66_p1), [#allocation6], 16  }
  0x78   : > { %2354 = vsyncadd (%p66_p1), [#allocation6], 4294967280 }
  0x79   : > { %2356 = dma.done.wait (%p66_p1), [#allocation9], 32  }
  0x7a   : > { %2358 = vsyncadd (%p66_p1), [#allocation9], 4294967264 }
  0x7b   : > { %2360 = dma.done.wait (%p66_p1), [#allocation12], 528  }
  0x7c   : > { %2362 = vsyncadd (%p66_p1), [#allocation12], 4294966768 }
  0x7d   : > { %2364 = dma.done.wait (%p66_p1), [#allocation15], 1024  }
  0x7e   : > { %2366 = vsyncadd (%p66_p1), [#allocation15], 4294966272 }
  0x7f   : > { %2368 = dma.done.wait (%p66_p1), [#allocation18], 1024  }
  0x80   : > { %2370 = vsyncadd (%p66_p1), [#allocation18], 4294966272  ;;  %s3045_s14 = sld [smem:[#allocation34_spill]]  ;;  %v917_v2 = vld [vmem:[#allocation14 + $0x18] sm:$0xff]  ;;  %vm890_vm0 = vcmask 261120   ;;  %s2402_s26 = smov 32  }
  0x81   : > { %932 = vrot.lane.b32.xlu0 %v917_v2, %s2402_s26  ;;  %v915_v5 = vld [vmem:[#allocation14 + $0x8] sm:$0xff]  ;;  %v2747_v6 = vld [vmem:[%s758_s27] sm:$0xff]  ;;  %v916_v7 = vld [vmem:[#allocation14 + $0x10] sm:$0xff]  ;;  %s3046_s9 = sld [smem:[#allocation35_spill]]  ;;  %s2403_s7 = smov 96  }
  0x82   : > { %928 = vrot.lane.b32.xlu1 %v915_v5, %s2402_s26  ;;  %v914_v8 = vld [vmem:[#allocation14] sm:$0xff]  ;;  %s2404_s27 = smov 64   ;;  %v921_v22 = vld [vmem:[#allocation16 + $0x18] sm:$0xff]  ;;  %v920_v23 = vld [vmem:[#allocation16 + $0x10] sm:$0xff]  ;;  %s3047_s1 = sld [smem:[#allocation36_spill]] }
  0x83   : > { %1022 = vmatpush.msra.mxu3 %v921_v22  ;;  %v919_v24 = vld [vmem:[#allocation16 + $0x8] sm:$0xff]  ;;  %v918_v37 = vld [vmem:[#allocation16] sm:$0xff]  ;;  %s3048_s10 = sld [smem:[#allocation38_spill]]  ;;  %s1769_s29 = sshll.u32 %s2545_s5, 3 }
  0x84   : > { %s3049_s18 = sld [smem:[#allocation41_spill]]  ;;  %s879_s5 = scalar_lea.vmem [#allocation20], %s2700_s21 }
  0x85   : > { %1023 = vmatpush.msra.mxu3 %v920_v23  ;;  %s3051_s11 = sld [smem:[#allocation44_spill]]  ;;  %s1526_s12 = scalar_lea.sflag [#allocation4], %s2697_s20 }
  0x86   : > { %v885_v0 = vld [vmem:[%s3045_s14 + $0x18] sm:$0xff]  ;;  %v884_v1 = vld [vmem:[%s3045_s14 + $0x10] sm:$0xff]  ;;  %v883_v3 = vld [vmem:[%s3045_s14 + $0x8] sm:$0xff]  ;;  %s3053_s23 = sld [smem:[#allocation51_spill]] }
  0x87   : > { %906 = vmatpush.msra.mxu0 %v885_v0  ;;  %v882_v4 = vld [vmem:[%s3045_s14] sm:$0xff]  ;;  %1024 = vmatpush.msra.mxu3 %v919_v24 }
  0x88   : > { %v1940_v10 = vld [vmem:[%s3046_s9] ss:$0 sm:$0xff]  ;;  %v1087_v50 = vld [vmem:[%s3047_s1 + $0x18] sm:$0xff]  ;;  %v1086_v51 = vld [vmem:[%s3047_s1 + $0x10] sm:$0xff]  ;;  %s3050_s9 = sld [smem:[#allocation45_spill]] }
  0x89   : > { %907 = vmatpush.msra.mxu0 %v884_v1  ;;  %930 = vrot.lane.b32.xlu0 %v916_v7, %s2402_s26  ;;  %v1085_v52 = vld [vmem:[%s3047_s1 + $0x8] sm:$0xff]  ;;  %v1084_v53 = vld [vmem:[%s3047_s1] sm:$0xff] }
  0x8a   : > { %926 = vrot.lane.b32.xlu1 %v914_v8, %s2402_s26  ;;  %1025 = vmatpush.msra.mxu3 %v918_v37 }
  0x8b   : > { %908 = vmatpush.msra.mxu0 %v883_v3  ;;  %v1941_v3 = vld [vmem:[#allocation7] ss:$0 sm:$0xff] }
  0x8c   : > { %s2319_s21 = scalar_lea.hbm %s3053_s23, 16 }
  0x8d   : > { %909 = vmatpush.msra.mxu0 %v882_v4 }
  0x8e   : > { %1748 = vmatmul.msk.f32.vlgmr.msra.gmra.mxu0 %vm890_vm0, %v2747_v6 }
  0x8f   : > { %1107 = vmatpush.msrb.mxu0 %v1087_v50 }
  0x91   : > { %1108 = vmatpush.msrb.mxu0 %v1086_v51  ;;  %v1943_v51 = vld [vmem:[%s2987_s17] ss:$0 sm:$0xff] }
  0x93   : > { %1109 = vmatpush.msrb.mxu0 %v1085_v52 }
  0x95   : > { %1110 = vmatpush.msrb.mxu0 %v1084_v53 }
  0xf3   : > { %v933_v11 = vpop.permute.xlu0 %932 }
  0xf4   : > { %v929_v9 = vpop.permute.xlu1 %928 }
  0xfb   : > { %v931_v18 = vpop.permute.xlu0 %930 }
  0xfc   : > { %v927_v13 = vpop.permute.xlu1 %926 }
 0x10b   : > { %v911_v12 = vpop.f32.mrf.mxu0 }
 0x10c   : > { %v912_v14 = vadd.f32 %v1940_v10, %v911_v12  ;;  %v1185_v10 = vld [vmem:[%s2978_s8 + $0x18] sm:$0xff]  ;;  %v1183_v12 = vld [vmem:[%s2978_s8 + $0x8] sm:$0xff] }
 0x10e   : > { %v938_v15 = vmul.f32 %v927_v13, %v912_v14  ;;  %v941_v16 = vmul.f32 %v933_v11, %v912_v14  ;;  %v939_v17 = vmul.f32 %v929_v9, %v912_v14  ;;  %v940_v19 = vmul.f32 %v931_v18, %v912_v14  ;;  %v1184_v11 = vld [vmem:[%s2978_s8 + $0x10] sm:$0xff] }
 0x10f   : > { %v2405_v9 = vmov 32.0  }
 0x110   : > { %968 = vrot.lane.b32.xlu2 %v941_v16, %s2403_s7  ;;  %964 = vrot.lane.b32.xlu0 %v939_v17, %s2403_s7 }
 0x111   : > { %962 = vrot.lane.b32.xlu1 %v938_v15, %s2403_s7 }
 0x118   : > { %966 = vrot.lane.b32.xlu2 %v940_v19, %s2403_s7  ;;  %948 = vrot.lane.b32.xlu0 %v917_v2, %s2404_s27 }
 0x119   : > { %946 = vrot.lane.b32.xlu1 %v916_v7, %s2404_s27 }
 0x120   : > { %944 = vrot.lane.b32.xlu0 %v915_v5, %s2404_s27 }
 0x121   : > { %942 = vrot.lane.b32.xlu1 %v914_v8, %s2404_s27 }
 0x16a   : > { %v969_v20 = vpop.permute.xlu2 %968 }
 0x16b   : > { %1749 = vmatpush.xpose.msk.msra.mxu1 %vm890_vm0, %v969_v20 }
 0x172   : > { %v967_v21 = vpop.permute.xlu2 %966 }
 0x173   : > { %1750 = vmatpush.xpose.msk.msra.mxu1 %vm890_vm0, %v967_v21 }
 0x182   : > { %v965_v25 = vpop.permute.xlu0 %964 }
 0x183   : > { %v963_v26 = vpop.permute.xlu1 %962  ;;  %1751 = vmatpush.xpose.msk.msra.mxu1 %vm890_vm0, %v965_v25  ;;  %v1154_v25 = vld [vmem:[%s3048_s10 + $0x18] sm:$0xff] }
 0x184   : > { %1174 = vmatpush.msra.mxu0 %v1154_v25 }
 0x187   : > { %1752 = vmatpush.xpose.msk.msra.mxu1 %vm890_vm0, %v963_v26  ;;  %v1153_v26 = vld [vmem:[%s3048_s10 + $0x10] sm:$0xff] }
 0x188   : > { %1175 = vmatpush.msra.mxu0 %v1153_v26 }
 0x18a   : > { %v949_v27 = vpop.permute.xlu0 %948  ;;  %1753 = vmatmul.msk.f32.vlgmr.msra.gmra.mxu1 %vm890_vm0, %v912_v14 }
 0x18b   : > { %v957_v28 = vmul.f32 %v949_v27, %v912_v14  ;;  %v947_v29 = vpop.permute.xlu1 %946  ;;  %v1152_v27 = vld [vmem:[%s3048_s10 + $0x8] sm:$0xff] }
 0x18c   : > { %v956_v30 = vmul.f32 %v947_v29, %v912_v14  ;;  %v1213_v29 = vld [vmem:[#allocation17] sm:$0xff]  ;;  %1176 = vmatpush.msra.mxu0 %v1152_v27 }
 0x18e   : > { %v1920_v31 = vpack.i.bf16 %v956_v30, %v957_v28  ;;  %v1214_v28 = vld [vmem:[#allocation17 + $0x8] sm:$0xff]  ;;  %v1151_v30 = vld [vmem:[%s3048_s10] sm:$0xff] }
 0x18f   : > { %1177 = vmatpush.msra.mxu0 %v1151_v30 }
 0x190   : > { %1921 = vrot.lane.b32.xlu0 %v1920_v31, %s2404_s27  ;;  %v1944_v31 = vld [vmem:[#allocation10] ss:$0 sm:$0xff] }
 0x192   : > { %v945_v32 = vpop.permute.xlu0 %944 }
 0x193   : > { %v955_v33 = vmul.f32 %v945_v32, %v912_v14  ;;  %v943_v34 = vpop.permute.xlu1 %942 }
 0x194   : > { %v954_v35 = vmul.f32 %v943_v34, %v912_v14  ;;  %v881_v14 = vld [vmem:[%s768_s22] sm:$0xff] }
 0x196   : > { %v1925_v36 = vpack.i.bf16 %v954_v35, %v955_v33  ;;  %v1216_v33 = vld [vmem:[#allocation17 + $0x18] sm:$0xff] }
 0x198   : > { %1926 = vrot.lane.b32.xlu1 %v1925_v36, %s2404_s27  ;;  %v1215_v36 = vld [vmem:[#allocation17 + $0x10] sm:$0xff]  ;;  %s3052_s27 = sld [smem:[#allocation46_spill]] }
 0x202   : > { %v1922_v38 = vpop.permute.xlu0 %1921 }
 0x203   : > { %v1923_v39 = vunpack.i.l.bf16 %v1922_v38  ;;  %v1924_v40 = vunpack.i.h.bf16 %v1922_v38 }
 0x205   : > { %1076 = vmatpush.msrb.mxu3 %v1923_v39 }
 0x207   : > { %1077 = vmatpush.msrb.mxu3 %v1924_v40  ;;  %v998_v41 = vpop.f32.mrf.mxu1 }
 0x208   : > { %v1001_v42 = vsel %vm890_vm0, %v998_v41, -inf }
 0x209   : > { %1002 = vmax.xlane.f32.xlu2 %v1001_v42 }
 0x20a   : > { %v1927_v43 = vpop.permute.xlu1 %1926 }
 0x20b   : > { %v1928_v44 = vunpack.i.l.bf16 %v1927_v43  ;;  %v1929_v45 = vunpack.i.h.bf16 %v1927_v43 }
 0x20d   : > { %1078 = vmatpush.msrb.mxu3 %v1928_v44 }
 0x20f   : > { %1079 = vmatpush.msrb.mxu3 %v1929_v45 }
 0x27c   : > { %v1003_v46 = vpop.xlane.xlu2 %1002 }
 0x27d   : > { %v1004_v47 = vsub.f32 %v998_v41, %v1003_v46 }
 0x27f   : > { %v1005_v48 = vmul.f32 1.442695, %v1004_v47 }
 0x281   : > { %1953 = vpow2.f32 %v1005_v48  ;;  %v1942_v48 = vld [vmem:[%s2986_s16] ss:$0 sm:$0xff] }
 0x287   : > { %v1954_v49 = vpop.eup %1953 }
 0x288   : > { %1754 = vmatmul.msk.f32.vlgmr.msra.gmra.mxu3 %vm890_vm0, %v1954_v49 }
 0x289   : > { %1205 = vmatpush.msra.mxu3 %v1185_v10 }
 0x28b   : > { %1206 = vmatpush.msra.mxu3 %v1184_v11 }
 0x28d   : > { %1207 = vmatpush.msra.mxu3 %v1183_v12 }
 0x30b   : > { %v1027_v54 = vpop.f32.mrf.mxu3 }
 0x30c   : > { %1955 = vrcp.f32 %v1027_v54  ;;  %v1041_v58 = vand.u32 2147483648, %v1027_v54  ;;  %v1039_v60 = vand.u32 2147483647, %v1027_v54  ;;  %vm1035_vm2 = vweird.f32 %v1027_v54 }
 0x30d   : > { %1957 = vrcp.f32 %v2405_v9 }
 0x30e   : > { %v1042_v62 = vor.u32 1.1754944e-38, %v1041_v58  ;;  %vm1040_vm4 = vcmp.eq.f32.partialorder %v1039_v60, 8.507059e+37  ;;  %v1220_v60 = vld [vmem:[#allocation19 + $0x18] sm:$0xff] }
 0x30f   : > { %1301 = vmatpush.msrb.mxu1 %v1220_v60  ;;  %v1465_v60 = vld [vmem:[%s3050_s9 + $0x50] sm:$0xff] }
 0x312   : > { %v1956_v55 = vpop.eup %1955 }
 0x313   : > { %v1031_v56 = vmul.f32 %v1956_v55, %v1027_v54  ;;  %vm1036_vm1 = vweird.f32 %v1956_v55  ;;  %v1958_v13 = vpop.eup %1957 }
 0x314   : > { %vm1037_vm3 = vmor %vm1035_vm2, %vm1036_vm1  ;;  %v1122_v15 = vmul.f32 32.0, %v1958_v13  ;;  %vm1126_vm5 = vweird.f32 %v1958_v13 }
 0x315   : > { %v1032_v57 = vsub.f32 1.0, %v1031_v56 }
 0x316   : > { %v1123_v16 = vsub.f32 1.0, %v1122_v15 }
 0x317   : > { %v1033_v59 = vmul.f32 %v1956_v55, %v1032_v57 }
 0x318   : > { %v1124_v17 = vmul.f32 %v1958_v13, %v1123_v16 }
 0x319   : > { %v1034_v61 = vadd.f32 %v1956_v55, %v1033_v59 }
 0x31a   : > { %v1125_v18 = vadd.f32 %v1958_v13, %v1124_v17 }
 0x31b   : > { %v1038_v63 = vsel %vm1037_vm3, %v1956_v55, %v1034_v61  ;;  %v1945_v55 = vld [vmem:[#allocation8] ss:$0 sm:$0xff]  ;;  %v1219_v61 = vld [vmem:[#allocation19 + $0x10] sm:$0xff] }
 0x31c   : > { %v1043_v0 = vsel %vm1040_vm4, %v1042_v62, %v1038_v63  ;;  %v2805_v19 = vsel %vm1126_vm5, %v1958_v13, %v1125_v18  ;;  %v1218_v62 = vld [vmem:[#allocation19 + $0x8] sm:$0xff]  ;;  %1302 = vmatpush.msrb.mxu1 %v1219_v61  ;;  %v1217_v63 = vld [vmem:[#allocation19] sm:$0xff] }
 0x31d   : > { %v1044_v1 = vmul.f32 %v1954_v49, %v1043_v0  ;;  %v1464_v61 = vld [vmem:[%s3050_s9 + $0x48] sm:$0xff] }
 0x31e   : > { %1303 = vmatpush.msrb.mxu1 %v1218_v62  ;;  %v1463_v62 = vld [vmem:[%s3050_s9 + $0x40] sm:$0xff] }
 0x31f   : > { %1755 = vmatmul.msk.f32.vlgmr.msrb.gmra.mxu3 %vm890_vm0, %v1044_v1 }
 0x320   : > { %1304 = vmatpush.msrb.mxu1 %v1217_v63 }
 0x3a2   : > { %v1081_v2 = vpop.f32.mrf.mxu3 }
 0x3a3   : > { %1756 = vmatmul.msk.f32.vlgmr.msrb.gmra.mxu0 %vm890_vm0, %v1081_v2 }
 0x420   : > { %v1112_v4 = vpop.f32.mrf.mxu0 }
 0x421   : > { %v1113_v5 = vadd.f32 %v1941_v3, %v1112_v4 }
 0x423   : > { %v1115_v7 = vadd.f32 %v1113_v5, %v2747_v6  ;;  %v1182_v6 = vld [vmem:[%s2978_s8] sm:$0xff] }
 0x424   : > { %1208 = vmatpush.msra.mxu3 %v1182_v6 }
 0x425   : > { %v1118_v8 = vsel %vm890_vm0, %v1115_v7, 0.0  ;;  %1758 = vmatmul.msk.f32.vlgmr.msra.gmra.mxu3 %vm890_vm0, %v881_v14 }
 0x426   : > { %1119 = vadd.xlane.f32.xlu0 %v1118_v8 }
 0x43a   : > { %1231 = vrot.lane.b32.xlu0 %v1214_v28, %s2402_s26 }
 0x499   : > { %v1120_v20 = vpop.xlane.xlu0 %1119 }
 0x49a   : > { %v1128_v21 = vmul.f32 %v2805_v19, %v1120_v20 }
 0x49c   : > { %v1129_v22 = vsub.f32 %v1115_v7, %v1128_v21  ;;  %v1366_v21 = vld [vmem:[%s3049_s18 + $0x18] sm:$0xff] }
 0x49d   : > { %1386 = vmatpush.msrb.mxu3 %v1366_v21 }
 0x49e   : > { %v1130_v23 = vmul.f32 %v1129_v22, %v1129_v22 }
 0x4a0   : > { %v1131_v24 = vsel %vm890_vm0, %v1130_v23, 0.0  ;;  %v1364_v23 = vld [vmem:[%s3049_s18 + $0x8] sm:$0xff] }
 0x4a1   : > { %1132 = vadd.xlane.f32.xlu1 %v1131_v24  ;;  %v1363_v24 = vld [vmem:[%s3049_s18] sm:$0xff] }
 0x4a8   : > { %v1210_v32 = vpop.f32.mrf.mxu3 }
 0x4a9   : > { %v1211_v34 = vadd.f32 %v1944_v31, %v1210_v32 }
 0x4ab   : > { %v1224_v38 = vmul.f32 %v1216_v33, %v1211_v34  ;;  %v1223_v40 = vmul.f32 %v1215_v36, %v1211_v34  ;;  %v1222_v41 = vmul.f32 %v1214_v28, %v1211_v34  ;;  %v1221_v54 = vmul.f32 %v1213_v29, %v1211_v34 }
 0x4ac   : > { %v1232_v11 = vpop.permute.xlu0 %1231 }
 0x4ad   : > { %1759 = vmatpush.xpose.msk.msrb.mxu0 %vm890_vm0, %v1224_v38  ;;  %v1242_v13 = vmul.f32 %v1232_v11, %v1211_v34  ;;  %v1946_v38 = vld [vmem:[#allocation11] ss:$0 sm:$0xff]  ;;  %v1947_v11 = vld [vmem:[%s2986_s16 + $0x1] ss:$0 sm:$0xff] }
 0x4b1   : > { %1760 = vmatpush.xpose.msk.msrb.mxu0 %vm890_vm0, %v1223_v40 }
 0x4b5   : > { %1761 = vmatpush.xpose.msk.msrb.mxu0 %vm890_vm0, %v1222_v41 }
 0x4b9   : > { %1762 = vmatpush.xpose.msk.msrb.mxu0 %vm890_vm0, %v1221_v54  ;;  %v1468_v54 = vld [vmem:[%s3050_s9 + $0x68] sm:$0xff] }
 0x4ba   : > { %1229 = vrot.lane.b32.xlu1 %v1213_v29, %s2402_s26 }
 0x514   : > { %v1133_v35 = vpop.xlane.xlu1 %1132 }
 0x515   : > { %v1134_v37 = vmul.f32 %v1133_v35, %v2805_v19 }
 0x517   : > { %v1135_v39 = vadd.f32 1e-05, %v1134_v37 }
 0x519   : > { %1959 = vrsqrt.f32 %v1135_v39  ;;  %vm1142_vm7 = vweird.f32 %v1135_v39 }
 0x51f   : > { %v1960_v42 = vpop.eup %1959 }
 0x520   : > { %v1137_v43 = vmul.f32 %v1960_v42, %v1135_v39  ;;  %vm1143_vm6 = vweird.f32 %v1960_v42 }
 0x521   : > { %vm1144_vm8 = vmor %vm1142_vm7, %vm1143_vm6 }
 0x522   : > { %v1138_v44 = vmul.f32 %v1960_v42, %v1137_v43 }
 0x524   : > { %v1139_v45 = vmul.f32 0.5, %v1138_v44 }
 0x526   : > { %v1140_v46 = vsub.f32 1.5, %v1139_v45 }
 0x528   : > { %v1141_v47 = vmul.f32 %v1960_v42, %v1140_v46 }
 0x52a   : > { %v1145_v49 = vsel %vm1144_vm8, %v1960_v42, %v1141_v47 }
 0x52b   : > { %v1146_v50 = vmul.f32 %v1145_v49, %v1129_v22  ;;  %v1365_v22 = vld [vmem:[%s3049_s18 + $0x10] sm:$0xff]  ;;  %v1425_v49 = vld [vmem:[#allocation13 + $0x10] sm:$0xff] }
 0x52c   : > { %v1230_v10 = vpop.permute.xlu1 %1229  ;;  %1387 = vmatpush.msrb.mxu3 %v1365_v22 }
 0x52d   : > { %v1148_v52 = vmul.f32 %v1942_v48, %v1146_v50  ;;  %v1241_v12 = vmul.f32 %v1230_v10, %v1211_v34  ;;  %v1426_v48 = vld [vmem:[#allocation13 + $0x18] sm:$0xff]  ;;  %v1424_v50 = vld [vmem:[#allocation13 + $0x8] sm:$0xff] }
 0x52e   : > { %1388 = vmatpush.msrb.mxu3 %v1364_v23  ;;  %1446 = vmatpush.msra.mxu1 %v1426_v48 }
 0x52f   : > { %v2833_v53 = vadd.f32 %v1943_v51, %v1148_v52  ;;  %v1935_v6 = vpack.i.bf16 %v1241_v12, %v1242_v13  ;;  %v1423_v51 = vld [vmem:[#allocation13] sm:$0xff]  ;;  %v1470_v52 = vld [vmem:[%s3050_s9 + $0x78] sm:$0xff] }
 0x530   : > { %1389 = vmatpush.msrb.mxu3 %v1363_v24  ;;  %1447 = vmatpush.msra.mxu1 %v1425_v49  ;;  %v1950_v24 = vld [vmem:[%s3052_s27] ss:$0 sm:$0xff] }
 0x531   : > { %1757 = vmatmul.msk.f32.vlgmr.msra.gmra.mxu0 %vm890_vm0, %v2833_v53 }
 0x532   : > { %1448 = vmatpush.msra.mxu1 %v1424_v50 }
 0x534   : > { %1449 = vmatpush.msra.mxu1 %v1423_v51 }
 0x5ae   : > { %v1179_v56 = vpop.f32.mrf.mxu0 }
 0x5af   : > { %v1180_v57 = vadd.f32 %v1945_v55, %v1179_v56 }
 0x5b1   : > { %1763 = vmatmul.msk.f32.vlgmr.msrb.gmra.mxu0 %vm890_vm0, %v1180_v57  ;;  %v1467_v57 = vld [vmem:[%s3050_s9 + $0x60] sm:$0xff] }
 0x62e   : > { %v1277_v58 = vpop.f32.mrf.mxu0 }
 0x62f   : > { %v1280_v59 = vsel %vm890_vm0, %v1277_v58, -inf }
 0x630   : > { %1281 = vmax.xlane.f32.xlu2 %v1280_v59  ;;  %v1466_v59 = vld [vmem:[%s3050_s9 + $0x58] sm:$0xff] }
 0x648   : > { %1235 = vrot.lane.b32.xlu2 %v1216_v33, %s2402_s26 }
 0x650   : > { %1233 = vrot.lane.b32.xlu2 %v1215_v36, %s2402_s26 }
 0x6a3   : > { %v1282_v0 = vpop.xlane.xlu2 %1281 }
 0x6a4   : > { %v1283_v1 = vsub.f32 %v1277_v58, %v1282_v0  ;;  %v1462_v0 = vld [vmem:[%s3050_s9 + $0x38] sm:$0xff] }
 0x6a6   : > { %v1284_v2 = vmul.f32 1.442695, %v1283_v1 }
 0x6a8   : > { %1961 = vpow2.f32 %v1284_v2  ;;  %v1461_v2 = vld [vmem:[%s3050_s9 + $0x30] sm:$0xff] }
 0x6ab   : > { %v1236_v3 = vpop.permute.xlu2 %1235 }
 0x6ac   : > { %v1244_v7 = vmul.f32 %v1236_v3, %v1211_v34 }
 0x6ae   : > { %v1962_v4 = vpop.eup %1961 }
 0x6af   : > { %1764 = vmatmul.msk.f32.vlgmr.msrb.gmra.mxu1 %vm890_vm0, %v1962_v4 }
 0x6b3   : > { %v1234_v5 = vpop.permute.xlu2 %1233 }
 0x6b4   : > { %v1243_v8 = vmul.f32 %v1234_v5, %v1211_v34 }
 0x6b6   : > { %v1930_v9 = vpack.i.bf16 %v1243_v8, %v1244_v7  ;;  %v1459_v7 = vld [vmem:[%s3050_s9 + $0x20] sm:$0xff] }
 0x6b8   : > { %1931 = vrot.lane.b32.xlu2 %v1930_v9, %s2403_s7  ;;  %v1458_v9 = vld [vmem:[%s3050_s9 + $0x18] sm:$0xff] }
 0x6c0   : > { %1936 = vrot.lane.b32.xlu2 %v1935_v6, %s2403_s7  ;;  %v1948_v6 = vld [vmem:[%s2987_s17 + $0x1] ss:$0 sm:$0xff]  ;;  %s1536_s7 = scalar_lea.hbm %s3053_s23, %s1769_s29 }
 0x6c1   : > { %s1540_s13 = sshll.u32 %s1536_s7, 4  ;;  %s1541_s13 = int_to_ptr.hbm [resolvable:$true] %s1540_s13 }
 0x6c2   : > { %s2313_s27 = sshra.s32 %s1541_s13, 4  ;;  %s2314_s27 = int_to_ptr.hbm [resolvable:$true] %s2313_s27 }
 0x6c3   : > { %s2315_s29 = scalar_lea.hbm %s2314_s27, 8  ;;  %p2320_p7 = scmp.lt.s32.totalorder %s2314_s27, %s3053_s23 }
 0x6c4   : > { %p2316_p1 = scmp.ne.s32.totalorder %s2314_s27, %s2315_s29  ;;  %p2321_p9 = scmp.lt.s32.totalorder %s2319_s21, %s2315_s29 }
 0x6c6   : > { %p2317_p3 = pnand %p2316_p1, %p2646_p0  ;;  %p2322_p8 = por %p2321_p9, %p2320_p7 }
 0x6c8   : > { %p2318_p13 = pneg %p2317_p3 }
 0x6ca   : > { %p2323_p10 = pnand %p2322_p8, %p2318_p13 }
 0x712   : > { %v1932_v14 = vpop.permute.xlu2 %1931 }
 0x713   : > { %v1933_v15 = vunpack.i.l.bf16 %v1932_v14  ;;  %v1934_v16 = vunpack.i.h.bf16 %v1932_v14 }
 0x715   : > { %1355 = vmatpush.msra.mxu2 %v1933_v15 }
 0x717   : > { %1356 = vmatpush.msra.mxu2 %v1934_v16  ;;  %v1457_v16 = vld [vmem:[%s3050_s9 + $0x10] sm:$0xff] }
 0x71a   : > { %v1937_v17 = vpop.permute.xlu2 %1936 }
 0x71b   : > { %v1938_v18 = vunpack.i.l.bf16 %v1937_v17  ;;  %v1939_v20 = vunpack.i.h.bf16 %v1937_v17  ;;  %v1456_v17 = vld [vmem:[%s3050_s9 + $0x8] sm:$0xff] }
 0x71d   : > { %1357 = vmatpush.msra.mxu2 %v1938_v18  ;;  %v1455_v18 = vld [vmem:[%s3050_s9] sm:$0xff] }
 0x71f   : > { %1358 = vmatpush.msra.mxu2 %v1939_v20  ;;  %v1949_v20 = vld [vmem:[%s3051_s11] ss:$0 sm:$0xff]  ;;  %s1538_s11 = sshll.u32 %s879_s5, 4  ;;  %s1539_s11 = int_to_ptr.vmem [resolvable:$true] %s1538_s11 }
 0x721   : > { %1475 = vmatpush.msrb.mxu2 %v1470_v52 }
 0x72c   : > { %v1306_v25 = vpop.f32.mrf.mxu1 }
 0x72d   : > { %1963 = vrcp.f32 %v1306_v25  ;;  %v1320_v29 = vand.u32 2147483648, %v1306_v25  ;;  %v1318_v31 = vand.u32 2147483647, %v1306_v25  ;;  %vm1314_vm10 = vweird.f32 %v1306_v25 }
 0x72f   : > { %v1321_v33 = vor.u32 1.1754944e-38, %v1320_v29  ;;  %vm1319_vm12 = vcmp.eq.f32.partialorder %v1318_v31, 8.507059e+37 }
 0x733   : > { %v1964_v26 = vpop.eup %1963 }
 0x734   : > { %v1310_v27 = vmul.f32 %v1964_v26, %v1306_v25  ;;  %vm1315_vm9 = vweird.f32 %v1964_v26 }
 0x735   : > { %vm1316_vm11 = vmor %vm1314_vm10, %vm1315_vm9 }
 0x736   : > { %v1311_v28 = vsub.f32 1.0, %v1310_v27 }
 0x738   : > { %v1312_v30 = vmul.f32 %v1964_v26, %v1311_v28 }
 0x73a   : > { %v1313_v32 = vadd.f32 %v1964_v26, %v1312_v30 }
 0x73c   : > { %v1317_v34 = vsel %vm1316_vm11, %v1964_v26, %v1313_v32 }
 0x73d   : > { %v1322_v35 = vsel %vm1319_vm12, %v1321_v33, %v1317_v34 }
 0x73e   : > { %v1323_v36 = vmul.f32 %v1962_v4, %v1322_v35  ;;  %v1460_v4 = vld [vmem:[%s3050_s9 + $0x28] sm:$0xff] }
 0x740   : > { %1765 = vmatmul.msk.f32.vlgmr.msra.gmra.mxu2 %vm890_vm0, %v1323_v36 }
 0x7c3   : > { %v1360_v37 = vpop.f32.mrf.mxu2 }
 0x7c4   : > { %1766 = vmatmul.msk.f32.vlgmr.msrb.gmra.mxu3 %vm890_vm0, %v1360_v37 }
 0x847   : > { %v1391_v39 = vpop.f32.mrf.mxu3 }
 0x848   : > { %v1392_v40 = vadd.f32 %v1946_v38, %v1391_v39 }
 0x84a   : > { %v1394_v41 = vadd.f32 %v1392_v40, %v2833_v53  ;;  %v1469_v53 = vld [vmem:[%s3050_s9 + $0x70] sm:$0xff] }
 0x84b   : > { %1476 = vmatpush.msrb.mxu2 %v1469_v53 }
 0x84c   : > { %v1397_v42 = vsel %vm890_vm0, %v1394_v41, 0.0 }
 0x84d   : > { %1398 = vadd.xlane.f32.xlu0 %v1397_v42  ;;  %1477 = vmatpush.msrb.mxu2 %v1468_v54 }
 0x84f   : > { %1478 = vmatpush.msrb.mxu2 %v1467_v57 }
 0x851   : > { %1479 = vmatpush.msrb.mxu2 %v1466_v59 }
 0x853   : > { %1480 = vmatpush.msrb.mxu2 %v1465_v60 }
 0x855   : > { %1481 = vmatpush.msrb.mxu2 %v1464_v61 }
 0x857   : > { %1482 = vmatpush.msrb.mxu2 %v1463_v62 }
 0x859   : > { %1483 = vmatpush.msrb.mxu2 %v1462_v0 }
 0x85b   : > { %1484 = vmatpush.msrb.mxu2 %v1461_v2 }
 0x85d   : > { %1485 = vmatpush.msrb.mxu2 %v1460_v4 }
 0x85f   : > { %1486 = vmatpush.msrb.mxu2 %v1459_v7 }
 0x861   : > { %1487 = vmatpush.msrb.mxu2 %v1458_v9 }
 0x863   : > { %1488 = vmatpush.msrb.mxu2 %v1457_v16 }
 0x865   : > { %1489 = vmatpush.msrb.mxu2 %v1456_v17 }
 0x867   : > { %1490 = vmatpush.msrb.mxu2 %v1455_v18 }
 0x8c0   : > { %v1399_v43 = vpop.xlane.xlu0 %1398 }
 0x8c1   : > { %v1400_v44 = vmul.f32 %v1399_v43, %v2805_v19  ;;  %v1951_v43 = vld [vmem:[%s2986_s16 + $0x2] ss:$0 sm:$0xff] }
 0x8c3   : > { %v1401_v45 = vsub.f32 %v1394_v41, %v1400_v44 }
 0x8c5   : > { %v1402_v46 = vmul.f32 %v1401_v45, %v1401_v45 }
 0x8c7   : > { %v1403_v47 = vsel %vm890_vm0, %v1402_v46, 0.0 }
 0x8c8   : > { %1404 = vadd.xlane.f32.xlu2 %v1403_v47 }
 0x93b   : > { %v1405_v55 = vpop.xlane.xlu2 %1404 }
 0x93c   : > { %v1406_v56 = vmul.f32 %v1405_v55, %v2805_v19 }
 0x93e   : > { %v1407_v58 = vadd.f32 1e-05, %v1406_v56 }
 0x940   : > { %1965 = vrsqrt.f32 %v1407_v58  ;;  %vm1414_vm14 = vweird.f32 %v1407_v58 }
 0x946   : > { %v1966_v63 = vpop.eup %1965 }
 0x947   : > { %v1409_v1 = vmul.f32 %v1966_v63, %v1407_v58  ;;  %vm1415_vm13 = vweird.f32 %v1966_v63 }
 0x948   : > { %vm1416_vm15 = vmor %vm1414_vm14, %vm1415_vm13 }
 0x949   : > { %v1410_v3 = vmul.f32 %v1966_v63, %v1409_v1 }
 0x94b   : > { %v1411_v5 = vmul.f32 0.5, %v1410_v3 }
 0x94d   : > { %v1412_v8 = vsub.f32 1.5, %v1411_v5 }
 0x94f   : > { %v1413_v10 = vmul.f32 %v1966_v63, %v1412_v8 }
 0x951   : > { %v1417_v12 = vsel %vm1416_vm15, %v1966_v63, %v1413_v10 }
 0x952   : > { %v1418_v13 = vmul.f32 %v1417_v12, %v1401_v45  ;;  %v1952_v45 = vld [vmem:[%s2987_s17 + $0x2] ss:$0 sm:$0xff] }
 0x954   : > { %v1420_v14 = vmul.f32 %v1947_v11, %v1418_v13 }
 0x956   : > { %v1422_v15 = vadd.f32 %v1948_v6, %v1420_v14 }
 0x958   : > { %1767 = vmatmul.msk.f32.vlgmr.msra.gmra.mxu1 %vm890_vm0, %v1422_v15 }
 0x9d5   : > { %v1451_v21 = vpop.f32.mrf.mxu1 }
 0x9d6   : > { %v1452_v22 = vadd.f32 %v1949_v20, %v1451_v21 }
 0x9d8   : > { %v1454_v23 = vmax.f32 %v1452_v22, 0.0 }
 0x9da   : > { %1491 = vmatmul.f32.vlgmr.msrb.gmra.mxu2 %v1454_v23 }
 0xa5d   : > { %v1492_v25 = vpop.f32.mrf.mxu2 }
 0xa5e   : > { %v1493_v26 = vadd.f32 %v1950_v24, %v1492_v25 }
 0xa60   : > { %v1495_v27 = vadd.f32 %v1493_v26, %v1422_v15 }
 0xa62   : > { %v1498_v28 = vsel %vm890_vm0, %v1495_v27, 0.0 }
 0xa63   : > { %1499 = vadd.xlane.f32.xlu1 %v1498_v28 }
 0xad6   : > { %v1500_v29 = vpop.xlane.xlu1 %1499 }
 0xad7   : > { %v1501_v30 = vmul.f32 %v1500_v29, %v2805_v19 }
 0xad9   : > { %v1502_v31 = vsub.f32 %v1495_v27, %v1501_v30 }
 0xadb   : > { %v1503_v32 = vmul.f32 %v1502_v31, %v1502_v31 }
 0xadd   : > { %v1504_v33 = vsel %vm890_vm0, %v1503_v32, 0.0 }
 0xade   : > { %1505 = vadd.xlane.f32.xlu0 %v1504_v33 }
 0xb51   : > { %v1506_v34 = vpop.xlane.xlu0 %1505 }
 0xb52   : > { %v1507_v35 = vmul.f32 %v1506_v34, %v2805_v19 }
 0xb54   : > { %v1508_v36 = vadd.f32 1e-05, %v1507_v35 }
 0xb56   : > { %1967 = vrsqrt.f32 %v1508_v36  ;;  %vm1515_vm2 = vweird.f32 %v1508_v36 }
 0xb5c   : > { %v1968_v37 = vpop.eup %1967 }
 0xb5d   : > { %v1510_v38 = vmul.f32 %v1968_v37, %v1508_v36  ;;  %vm1516_vm1 = vweird.f32 %v1968_v37 }
 0xb5e   : > { %vm1517_vm3 = vmor %vm1515_vm2, %vm1516_vm1 }
 0xb5f   : > { %v1511_v39 = vmul.f32 %v1968_v37, %v1510_v38 }
 0xb61   : > { %v1512_v40 = vmul.f32 0.5, %v1511_v39 }
 0xb63   : > { %v1513_v41 = vsub.f32 1.5, %v1512_v40 }
 0xb65   : > { %v1514_v42 = vmul.f32 %v1968_v37, %v1513_v41 }
 0xb67   : > { %v1518_v19 = vsel %vm1517_vm3, %v1968_v37, %v1514_v42 }
 0xb68   : > { %v1519_v44 = vmul.f32 %v1518_v19, %v1502_v31 }
 0xb6a   : > { %v1521_v46 = vmul.f32 %v1951_v43, %v1519_v44 }
 0xb6c   : > { %v1523_v47 = vadd.f32 %v1952_v45, %v1521_v46 }
 0xb6e   : > { %1524 = vst.msk [vmem:[%s879_s5] sm:$0xff] %vm890_vm0, %v1523_v47 }
 0xb6f   : > { %2326 = shalt.err (!%p2323_p10)
}
 0xb70   : > { %1812 = dma.vmem_to_hbm [thread:$0]  (%p2646_p0), %s1539_s11, 128, %s1541_s13, %s1526_s12  }
 0xb71 PF: > { %s1552_s20 = sand.u32 1, %s2377_s3   ;;  %p3054_p12 = scmp.ge.s32.totalorder %s2389_s30, 2 }
 0xb72   : > { %s1553_s7 = scalar_lea.sflag [#allocation4], %s1552_s20 }
 0xb73   : > { %p1850_p4 = pnand %p3054_p12, %p2652_p6 }
 0xb75   : > { %p1851_p11 = pneg %p1850_p4 }
 0xb77   : > { %2372 = dma.done.wait (%p1851_p11), %s1553_s7, 128  }
 0xb78   : > { %2374 = vsyncadd (%p1851_p11), %s1553_s7, 4294967168  ;;  %s3055_s30 = sld [smem:[#allocation30_spill]]  ;;  %s3058_s3 = smov %s2381_s28 }
 0xb79   : > { %s3056_s4 = sld [smem:[#allocation29_spill]] }
 0xb7a   : > { %s3057_s29 = sld [smem:[#allocation31_spill]] }
 0xb7e   : > { %p42_p2 = scmp.ge.s32.totalorder %s3055_s30, 4  }
 0xb7f   : > { %s3059_s28 = smov %s3056_s4 }
 0xb80   :  { %44 = sbr.rel (!%p42_p2) target bundleno = 32 (0x20), region = 202 }
 0xb85   :  { %1559 = vsyncpa [#allocation3], 1 }
 0xb86   :  { %1561 = vsyncpa [#allocation3 + $0x1], 1 }
 0xb87   :  { %1562 = vsyncpa [#allocation6], 1 }
 0xb88   :  { %1564 = vsyncpa [#allocation6 + $0x1], 1 }
 0xb89   :  { %1565 = vsyncpa [#allocation9], 1 }
 0xb8a   :  { %1566 = vsyncpa [#allocation12], 1 }
 0xb8b   :  { %1567 = vsyncpa [#allocation15], 1 }
 0xb8c   :  { %1568 = vsyncpa [#allocation18], 1 }
 0xb8d   :  { %1569 = vsyncpa [#allocation4], 1 }
 0xb8e   :  { %1571 = vsyncpa [#allocation4 + $0x1], 1 }

</bundles_post_ra>
